<compile_context>
chip_gen: v7x
topology: tpu7x:2x2x1
jax: 0.10.0
libtpu: 0.0.40
codegen_flags: <defaults>
</compile_context>

<pallas_src>
import jax
import jax.numpy as jnp
from jax import lax
from jax.experimental import pallas as pl
from jax.experimental.pallas import tpu as pltpu

# ------------------------- problem sizes (small) -------------------------
NUM_INSTRS = 8       # I : instructions per basic block
NUM_TOKENS = 8       # T : tokens per instruction
EMB = 32             # E : embedding_size
HID = 32             # H : hidden_size
NCLS = 1             # num_classes (throughput prediction -> scalar)
VOCAB = 64           # embedding dictionary size
BATCH = 4            # number of basic blocks processed per call
BLOCK_TILE = BATCH   # blocks vectorized per grid step -> grid collapses to (1,)


# ------------------------------ Pallas kernel ------------------------------
def ithemal_rnn_kernel(ids_ref,                               # (R, 1) int32, rows = (t, i, b)
                       emb_proj_ref,                          # (VOCAB, 4H) = emb@Wih_tok.T + b
                       whh_tok_ref,                           # (H, 4H)
                       wih_ins_ref, whh_ins_ref, b_ins_ref,   # instr LSTM
                       hout_ref,                              # (Bt, H) final instr-LSTM hidden
                       xw_ref):                               # VMEM scratch (R, 4H)
    H = HID
    T = NUM_TOKENS
    I = NUM_INSTRS
    Bt = hout_ref.shape[0]
    rows = ids_ref.shape[0]          # T * I * Bt
    tok_cols = I * Bt                # batch width of the token LSTM

    def lstm_gates(gates, c):
        # Two full-vreg EUP passes (sigmoid + tanh over all 4H lanes) instead
        # of four partial-lane launches; unwanted lanes are simply discarded.
        sig = jax.nn.sigmoid(gates)
        tnh = jnp.tanh(gates)
        i_g = sig[:, 0 * H:1 * H]
        f_g = sig[:, 1 * H:2 * H]
        g_g = tnh[:, 2 * H:3 * H]
        o_g = sig[:, 3 * H:4 * H]
        c_new = f_g * c + i_g * g_g
        h_new = o_g * jnp.tanh(c_new)
        return h_new, c_new

    # ---- fused gather of the precomputed token-LSTM input projection --------
    # one-hot(ids) @ emb_proj -> per-token (x @ Wih.T + bih + bhh); done once,
    # off the serial chain, and staged in VMEM (not kept live in vregs).
    onehot = (ids_ref[...] ==
              lax.broadcasted_iota(jnp.int32, (rows, VOCAB), 1)
              ).astype(jnp.float32)
    xw_ref[...] = jnp.dot(onehot, emb_proj_ref[...],
                          preferred_element_type=jnp.float32)

    # ---- token-level LSTM: fully unrolled, one matmul per serial step -------
    whh_t = whh_tok_ref[...]
    h = jnp.zeros((tok_cols, H), jnp.float32)
    c = jnp.zeros((tok_cols, H), jnp.float32)
    for t in range(T):                                   # static unroll
        gates = (xw_ref[t * tok_cols:(t + 1) * tok_cols, :]     # static slice
                 + jnp.dot(h, whh_t, preferred_element_type=jnp.float32))
        h, c = lstm_gates(gates, c)
    h_tok = h                                            # (I*Bt, H), rows (i, b)

    # ---- instruction-level LSTM: input projection hoisted, fully unrolled ---
    xw_ins = (jnp.dot(h_tok, wih_ins_ref[...],
                      preferred_element_type=jnp.float32) + b_ins_ref[...])
    whh_i = whh_ins_ref[...]
    h1 = jnp.zeros((Bt, H), jnp.float32)
    c1 = jnp.zeros((Bt, H), jnp.float32)
    for i in range(I):                                   # static unroll
        gates = (xw_ins[i * Bt:(i + 1) * Bt, :]                 # static slice
                 + jnp.dot(h1, whh_i, preferred_element_type=jnp.float32))
        h1, c1 = lstm_gates(gates, c1)

    # ---- lane-dense writeback: final hidden state, linear head done in XLA --
    hout_ref[...] = h1


def rnn_forward(token_ids, params, block_tile=BLOCK_TILE):
    """token_ids: (B, I, T) int32.  Returns (B,) f32 predictions (NCLS == 1)."""
    B = token_ids.shape[0]
    assert B % block_tile == 0, "demo requires B % BLOCK_TILE == 0"
    b_outer = B // block_tile
    Bt = block_tile
    R = NUM_TOKENS * NUM_INSTRS * Bt

    # Lay the token ids out as (chunk, t, i, b_inner) so every serial step in
    # the kernel reads a *static, contiguous* sublane slice.  Clamp ids so an
    # out-of-range token behaves like the (clamping) JAX gather reference.
    ids = (jnp.clip(token_ids.astype(jnp.int32), 0, VOCAB - 1)
           .reshape(b_outer, Bt, NUM_INSTRS, NUM_TOKENS)
           .transpose(0, 3, 2, 1)                # (b_outer, T, I, Bt)
           .reshape(b_outer, R, 1))

    # Grid-invariant prologue hoisted out of the kernel: project the whole
    # (tiny) vocabulary once -> (VOCAB, 4H) and fold in both token-LSTM biases.
    emb_proj = (jnp.dot(params["embedding"], params["wih_tok"].T,
                        precision=lax.Precision.HIGHEST)
                + (params["bih_tok"] + params["bhh_tok"])[None, :])

    args = (
        ids,
        emb_proj,                                              # (VOCAB, 4H)
        params["whh_tok"].T,                                   # (H, 4H)
        params["wih_ins"].T, params["whh_ins"].T,              # (H,4H), (H,4H)
        (params["bih_ins"] + params["bhh_ins"])[None, :],      # (1, 4H)
    )

    def full(shape):   # whole-array VMEM block, invariant across the grid
        return pl.BlockSpec(shape, lambda g, _s=shape: tuple(0 for _ in _s))

    in_specs = [
        pl.BlockSpec((None, R, 1), lambda g: (g, 0, 0)),       # ids, per chunk
        full((VOCAB, 4 * HID)),
        full((HID, 4 * HID)),
        full((HID, 4 * HID)), full((HID, 4 * HID)), full((1, 4 * HID)),
    ]

    h_final = pl.pallas_call(
        ithemal_rnn_kernel,
        out_shape=jax.ShapeDtypeStruct((b_outer, Bt, HID), jnp.float32),
        grid=(b_outer,),
        in_specs=in_specs,
        out_specs=pl.BlockSpec((None, Bt, HID), lambda g: (g, 0, 0)),
        scratch_shapes=[pltpu.VMEM((R, 4 * HID), jnp.float32)],
        compiler_params=pltpu.CompilerParams(
            # Only shard chunks across v7x TCs once each core keeps a
            # sublane-filled batch; at B=4 the grid is a single step anyway.
            dimension_semantics=(
                ("parallel",) if block_tile >= 8 else ("arbitrary",))),
    )(*args)

    # Trivial, lane-dense final linear (B,H)@(H,1)+b in XLA.
    h_final = h_final.reshape(B, HID)
    pred = (jnp.dot(h_final, params["w_lin"].T,
                    precision=lax.Precision.HIGHEST)
            + params["b_lin"][None, :])
    return pred[:, 0]


# ------------------------- pure-JAX reference (check) -----------------------
def _lstm_step_ref(x, h, c, wih, whh, bih, bhh):
    g = x @ wih.T + bih + h @ whh.T + bhh
    H = h.shape[-1]
    i = jax.nn.sigmoid(g[..., 0 * H:1 * H])
    f = jax.nn.sigmoid(g[..., 1 * H:2 * H])
    gg = jnp.tanh(g[..., 2 * H:3 * H])
    o = jax.nn.sigmoid(g[..., 3 * H:4 * H])
    c = f * c + i * gg
    h = o * jnp.tanh(c)
    return h, c


def rnn_forward_ref(token_ids, p):
    B = token_ids.shape[0]
    emb = p["embedding"]
    preds = []
    for b in range(B):
        last_outputs = []
        for ins in range(NUM_INSTRS):                  # token LSTM per instr
            h = jnp.zeros((1, HID)); c = jnp.zeros((1, HID))
            for t in range(NUM_TOKENS):
                x = emb[token_ids[b, ins, t]][None, :]
                h, c = _lstm_step_ref(x, h, c, p["wih_tok"], p["whh_tok"],
                                      p["bih_tok"], p["bhh_tok"])
            last_outputs.append(h)
        h = jnp.zeros((1, HID)); c = jnp.zeros((1, HID))
        for ins in range(NUM_INSTRS):                  # instruction LSTM
            h, c = _lstm_step_ref(last_outputs[ins], h, c, p["wih_ins"],
                                  p["whh_ins"], p["bih_ins"], p["bhh_ins"])
        preds.append((h @ p["w_lin"].T + p["b_lin"]).squeeze())
    return jnp.stack(preds)


# --------------------------------- params -----------------------------------
def init_params(key):
    ks = jax.random.split(key, 12)
    k = 1.0 / jnp.sqrt(HID)
    u = lambda kk, shape, s: jax.random.uniform(kk, shape, jnp.float32, -s, s)
    return {
        "embedding": u(ks[0], (VOCAB, EMB), 0.1),
        # token LSTM: nn.LSTM(EMB, HID)
        "wih_tok": u(ks[1], (4 * HID, EMB), k),
        "whh_tok": u(ks[2], (4 * HID, HID), k),
        "bih_tok": u(ks[3], (4 * HID,), k),
        "bhh_tok": u(ks[4], (4 * HID,), k),
        # instruction LSTM: nn.LSTM(HID, HID)
        "wih_ins": u(ks[5], (4 * HID, HID), k),
        "whh_ins": u(ks[6], (4 * HID, HID), k),
        "bih_ins": u(ks[7], (4 * HID,), k),
        "bhh_ins": u(ks[8], (4 * HID,), k),
        # linear: nn.Linear(HID, NCLS)
        "w_lin": u(ks[9], (NCLS, HID), k),
        "b_lin": u(ks[10], (NCLS,), k),
    }


if __name__ == "__main__":
    key = jax.random.PRNGKey(0)
    pkey, tkey = jax.random.split(key)
    params = init_params(pkey)
    token_ids = jax.random.randint(tkey, (BATCH, NUM_INSTRS, NUM_TOKENS),
                                   0, VOCAB, dtype=jnp.int32)

    pred = jax.block_until_ready(jax.jit(rnn_forward)(token_ids, params))
    ref = jax.block_until_ready(rnn_forward_ref(token_ids, params))

    assert pred.shape == ref.shape == (BATCH,)
    # f32 tolerance (MXU multi-pass f32 vs XLA default-precision reference)
    assert jnp.allclose(pred, ref, atol=1e-4, rtol=1e-4), (pred, ref)
    print("KERNEL_OK")
</pallas_src>

<mosaic_0001>
module attributes {stable_mosaic.version = 11 : i64} {
  func.func @ithemal_rnn_kernel(%arg0: i32, %arg1: memref<1x256x1xi32, #tpu.memory_space<vmem>>, %arg2: memref<64x128xf32, #tpu.memory_space<vmem>>, %arg3: memref<32x128xf32, #tpu.memory_space<vmem>>, %arg4: memref<32x128xf32, #tpu.memory_space<vmem>>, %arg5: memref<32x128xf32, #tpu.memory_space<vmem>>, %arg6: memref<1x128xf32, #tpu.memory_space<vmem>>, %arg7: memref<1x4x32xf32, #tpu.memory_space<vmem>>, %arg8: memref<256x128xf32, #tpu.memory_space<vmem>>) attributes {dimension_semantics = [#tpu.dimension_semantics<arbitrary>], iteration_bounds = array<i64: 1>, scalar_prefetch = 0 : i64, scratch_operands = 1 : i64, tpu.core_type = #tpu.core_type<tc>, window_params = [{transform_indices = @transform_0, window_bounds = array<i64: 1, 256, 1>}, {pipeline_mode = #tpu.pipeline_mode<synchronous>, transform_indices = @transform_1, window_bounds = array<i64: 64, 128>}, {pipeline_mode = #tpu.pipeline_mode<synchronous>, transform_indices = @transform_2, window_bounds = array<i64: 32, 128>}, {pipeline_mode = #tpu.pipeline_mode<synchronous>, transform_indices = @transform_3, window_bounds = array<i64: 32, 128>}, {pipeline_mode = #tpu.pipeline_mode<synchronous>, transform_indices = @transform_4, window_bounds = array<i64: 32, 128>}, {pipeline_mode = #tpu.pipeline_mode<synchronous>, transform_indices = @transform_5, window_bounds = array<i64: 1, 128>}, {transform_indices = @transform_6, window_bounds = array<i64: 1, 4, 32>}]} {
    %c0 = arith.constant 0 : index
    %c0_0 = arith.constant 0 : index
    %c0_1 = arith.constant 0 : index
    %0 = vector.load %arg1[%c0, %c0_0, %c0_1] : memref<1x256x1xi32, #tpu.memory_space<vmem>>, vector<1x256x1xi32>
    %1 = vector.shape_cast %0 : vector<1x256x1xi32> to vector<256x1xi32>
    %2 = tpu.iota {dimensions = array<i32: 1>} : vector<256x64xi32>
    %3 = vector.broadcast %1 : vector<256x1xi32> to vector<256x64xi32>
    %4 = arith.cmpi eq, %3, %2 : vector<256x64xi32>
    %5 = arith.extui %4 : vector<256x64xi1> to vector<256x64xi32>
    %6 = arith.sitofp %5 : vector<256x64xi32> to vector<256x64xf32>
    %c0_2 = arith.constant 0 : index
    %c0_3 = arith.constant 0 : index
    %7 = vector.load %arg2[%c0_2, %c0_3] : memref<64x128xf32, #tpu.memory_space<vmem>>, vector<64x128xf32>
    %cst = arith.constant dense<0.000000e+00> : vector<256x128xf32>
    %8 = tpu.matmul %6, %7, %cst {dimension_numbers = #tpu.dot_dimension_numbers<[1], [0], [0], [1], [0, 0, 1, 1], [], []>} : vector<256x64xf32>, vector<64x128xf32>, vector<256x128xf32> -> vector<256x128xf32>
    %c0_4 = arith.constant 0 : index
    %c0_5 = arith.constant 0 : index
    %9 = vector.load %arg8[%c0_4, %c0_5] : memref<256x128xf32, #tpu.memory_space<vmem>>, vector<256x128xf32>
    tpu.vector_store %arg8[%c0_4, %c0_5], %8 {strides = array<i32>} : memref<256x128xf32, #tpu.memory_space<vmem>>, vector<256x128xf32>,
    %c0_6 = arith.constant 0 : index
    %c0_7 = arith.constant 0 : index
    %10 = vector.load %arg3[%c0_6, %c0_7] : memref<32x128xf32, #tpu.memory_space<vmem>>, vector<32x128xf32>
    %cst_8 = arith.constant 0.000000e+00 : f32
    %11 = vector.broadcast %cst_8 : f32 to vector<32x32xf32>
    %cst_9 = arith.constant 0.000000e+00 : f32
    %12 = vector.broadcast %cst_9 : f32 to vector<32x32xf32>
    %c0_10 = arith.constant 0 : index
    %c0_11 = arith.constant 0 : index
    %13 = vector.load %arg8[%c0_10, %c0_11] : memref<256x128xf32, #tpu.memory_space<vmem>>, vector<32x128xf32>
    %cst_12 = arith.constant dense<0.000000e+00> : vector<32x128xf32>
    %14 = tpu.matmul %11, %10, %cst_12 {dimension_numbers = #tpu.dot_dimension_numbers<[1], [0], [0], [1], [0, 0, 1, 1], [], []>} : vector<32x32xf32>, vector<32x128xf32>, vector<32x128xf32> -> vector<32x128xf32>
    %15 = arith.addf %13, %14 : vector<32x128xf32>
    %16 = arith.negf %15 : vector<32x128xf32>
    %17 = math.exp %16 : vector<32x128xf32>
    %cst_13 = arith.constant 1.000000e+00 : f32
    %18 = vector.broadcast %cst_13 : f32 to vector<32x128xf32>
    %19 = arith.addf %18, %17 : vector<32x128xf32>
    %20 = arith.divf %18, %19 : vector<32x128xf32>
    %21 = math.tanh %15 : vector<32x128xf32>
    %22 = vector.extract_strided_slice %20 {offsets = [0, 0], sizes = [32, 32], strides = [1, 1]} : vector<32x128xf32> to vector<32x32xf32>
    %23 = vector.extract_strided_slice %20 {offsets = [0, 32], sizes = [32, 32], strides = [1, 1]} : vector<32x128xf32> to vector<32x32xf32>
    %24 = vector.extract_strided_slice %21 {offsets = [0, 64], sizes = [32, 32], strides = [1, 1]} : vector<32x128xf32> to vector<32x32xf32>
    %25 = vector.extract_strided_slice %20 {offsets = [0, 96], sizes = [32, 32], strides = [1, 1]} : vector<32x128xf32> to vector<32x32xf32>
    %26 = arith.mulf %23, %12 : vector<32x32xf32>
    %27 = arith.mulf %22, %24 : vector<32x32xf32>
    %28 = arith.addf %26, %27 : vector<32x32xf32>
    %29 = math.tanh %28 : vector<32x32xf32>
    %30 = arith.mulf %25, %29 : vector<32x32xf32>
    %c32 = arith.constant 32 : index
    %c0_14 = arith.constant 0 : index
    %31 = vector.load %arg8[%c32, %c0_14] : memref<256x128xf32, #tpu.memory_space<vmem>>, vector<32x128xf32>
    %cst_15 = arith.constant dense<0.000000e+00> : vector<32x128xf32>
    %32 = tpu.matmul %30, %10, %cst_15 {dimension_numbers = #tpu.dot_dimension_numbers<[1], [0], [0], [1], [0, 0, 1, 1], [], []>} : vector<32x32xf32>, vector<32x128xf32>, vector<32x128xf32> -> vector<32x128xf32>
    %33 = arith.addf %31, %32 : vector<32x128xf32>
    %34 = arith.negf %33 : vector<32x128xf32>
    %35 = math.exp %34 : vector<32x128xf32>
    %cst_16 = arith.constant 1.000000e+00 : f32
    %36 = vector.broadcast %cst_16 : f32 to vector<32x128xf32>
    %37 = arith.addf %36, %35 : vector<32x128xf32>
    %38 = arith.divf %36, %37 : vector<32x128xf32>
    %39 = math.tanh %33 : vector<32x128xf32>
    %40 = vector.extract_strided_slice %38 {offsets = [0, 0], sizes = [32, 32], strides = [1, 1]} : vector<32x128xf32> to vector<32x32xf32>
    %41 = vector.extract_strided_slice %38 {offsets = [0, 32], sizes = [32, 32], strides = [1, 1]} : vector<32x128xf32> to vector<32x32xf32>
    %42 = vector.extract_strided_slice %39 {offsets = [0, 64], sizes = [32, 32], strides = [1, 1]} : vector<32x128xf32> to vector<32x32xf32>
    %43 = vector.extract_strided_slice %38 {offsets = [0, 96], sizes = [32, 32], strides = [1, 1]} : vector<32x128xf32> to vector<32x32xf32>
    %44 = arith.mulf %41, %28 : vector<32x32xf32>
    %45 = arith.mulf %40, %42 : vector<32x32xf32>
    %46 = arith.addf %44, %45 : vector<32x32xf32>
    %47 = math.tanh %46 : vector<32x32xf32>
    %48 = arith.mulf %43, %47 : vector<32x32xf32>
    %c64 = arith.constant 64 : index
    %c0_17 = arith.constant 0 : index
    %49 = vector.load %arg8[%c64, %c0_17] : memref<256x128xf32, #tpu.memory_space<vmem>>, vector<32x128xf32>
    %cst_18 = arith.constant dense<0.000000e+00> : vector<32x128xf32>
    %50 = tpu.matmul %48, %10, %cst_18 {dimension_numbers = #tpu.dot_dimension_numbers<[1], [0], [0], [1], [0, 0, 1, 1], [], []>} : vector<32x32xf32>, vector<32x128xf32>, vector<32x128xf32> -> vector<32x128xf32>
    %51 = arith.addf %49, %50 : vector<32x128xf32>
    %52 = arith.negf %51 : vector<32x128xf32>
    %53 = math.exp %52 : vector<32x128xf32>
    %cst_19 = arith.constant 1.000000e+00 : f32
    %54 = vector.broadcast %cst_19 : f32 to vector<32x128xf32>
    %55 = arith.addf %54, %53 : vector<32x128xf32>
    %56 = arith.divf %54, %55 : vector<32x128xf32>
    %57 = math.tanh %51 : vector<32x128xf32>
    %58 = vector.extract_strided_slice %56 {offsets = [0, 0], sizes = [32, 32], strides = [1, 1]} : vector<32x128xf32> to vector<32x32xf32>
    %59 = vector.extract_strided_slice %56 {offsets = [0, 32], sizes = [32, 32], strides = [1, 1]} : vector<32x128xf32> to vector<32x32xf32>
    %60 = vector.extract_strided_slice %57 {offsets = [0, 64], sizes = [32, 32], strides = [1, 1]} : vector<32x128xf32> to vector<32x32xf32>
    %61 = vector.extract_strided_slice %56 {offsets = [0, 96], sizes = [32, 32], strides = [1, 1]} : vector<32x128xf32> to vector<32x32xf32>
    %62 = arith.mulf %59, %46 : vector<32x32xf32>
    %63 = arith.mulf %58, %60 : vector<32x32xf32>
    %64 = arith.addf %62, %63 : vector<32x32xf32>
    %65 = math.tanh %64 : vector<32x32xf32>
    %66 = arith.mulf %61, %65 : vector<32x32xf32>
    %c96 = arith.constant 96 : index
    %c0_20 = arith.constant 0 : index
    %67 = vector.load %arg8[%c96, %c0_20] : memref<256x128xf32, #tpu.memory_space<vmem>>, vector<32x128xf32>
    %cst_21 = arith.constant dense<0.000000e+00> : vector<32x128xf32>
    %68 = tpu.matmul %66, %10, %cst_21 {dimension_numbers = #tpu.dot_dimension_numbers<[1], [0], [0], [1], [0, 0, 1, 1], [], []>} : vector<32x32xf32>, vector<32x128xf32>, vector<32x128xf32> -> vector<32x128xf32>
    %69 = arith.addf %67, %68 : vector<32x128xf32>
    %70 = arith.negf %69 : vector<32x128xf32>
    %71 = math.exp %70 : vector<32x128xf32>
    %cst_22 = arith.constant 1.000000e+00 : f32
    %72 = vector.broadcast %cst_22 : f32 to vector<32x128xf32>
    %73 = arith.addf %72, %71 : vector<32x128xf32>
    %74 = arith.divf %72, %73 : vector<32x128xf32>
    %75 = math.tanh %69 : vector<32x128xf32>
    %76 = vector.extract_strided_slice %74 {offsets = [0, 0], sizes = [32, 32], strides = [1, 1]} : vector<32x128xf32> to vector<32x32xf32>
    %77 = vector.extract_strided_slice %74 {offsets = [0, 32], sizes = [32, 32], strides = [1, 1]} : vector<32x128xf32> to vector<32x32xf32>
    %78 = vector.extract_strided_slice %75 {offsets = [0, 64], sizes = [32, 32], strides = [1, 1]} : vector<32x128xf32> to vector<32x32xf32>
    %79 = vector.extract_strided_slice %74 {offsets = [0, 96], sizes = [32, 32], strides = [1, 1]} : vector<32x128xf32> to vector<32x32xf32>
    %80 = arith.mulf %77, %64 : vector<32x32xf32>
    %81 = arith.mulf %76, %78 : vector<32x32xf32>
    %82 = arith.addf %80, %81 : vector<32x32xf32>
    %83 = math.tanh %82 : vector<32x32xf32>
    %84 = arith.mulf %79, %83 : vector<32x32xf32>
    %c128 = arith.constant 128 : index
    %c0_23 = arith.constant 0 : index
    %85 = vector.load %arg8[%c128, %c0_23] : memref<256x128xf32, #tpu.memory_space<vmem>>, vector<32x128xf32>
    %cst_24 = arith.constant dense<0.000000e+00> : vector<32x128xf32>
    %86 = tpu.matmul %84, %10, %cst_24 {dimension_numbers = #tpu.dot_dimension_numbers<[1], [0], [0], [1], [0, 0, 1, 1], [], []>} : vector<32x32xf32>, vector<32x128xf32>, vector<32x128xf32> -> vector<32x128xf32>
    %87 = arith.addf %85, %86 : vector<32x128xf32>
    %88 = arith.negf %87 : vector<32x128xf32>
    %89 = math.exp %88 : vector<32x128xf32>
    %cst_25 = arith.constant 1.000000e+00 : f32
    %90 = vector.broadcast %cst_25 : f32 to vector<32x128xf32>
    %91 = arith.addf %90, %89 : vector<32x128xf32>
    %92 = arith.divf %90, %91 : vector<32x128xf32>
    %93 = math.tanh %87 : vector<32x128xf32>
    %94 = vector.extract_strided_slice %92 {offsets = [0, 0], sizes = [32, 32], strides = [1, 1]} : vector<32x128xf32> to vector<32x32xf32>
    %95 = vector.extract_strided_slice %92 {offsets = [0, 32], sizes = [32, 32], strides = [1, 1]} : vector<32x128xf32> to vector<32x32xf32>
    %96 = vector.extract_strided_slice %93 {offsets = [0, 64], sizes = [32, 32], strides = [1, 1]} : vector<32x128xf32> to vector<32x32xf32>
    %97 = vector.extract_strided_slice %92 {offsets = [0, 96], sizes = [32, 32], strides = [1, 1]} : vector<32x128xf32> to vector<32x32xf32>
    %98 = arith.mulf %95, %82 : vector<32x32xf32>
    %99 = arith.mulf %94, %96 : vector<32x32xf32>
    %100 = arith.addf %98, %99 : vector<32x32xf32>
    %101 = math.tanh %100 : vector<32x32xf32>
    %102 = arith.mulf %97, %101 : vector<32x32xf32>
    %c160 = arith.constant 160 : index
    %c0_26 = arith.constant 0 : index
    %103 = vector.load %arg8[%c160, %c0_26] : memref<256x128xf32, #tpu.memory_space<vmem>>, vector<32x128xf32>
    %cst_27 = arith.constant dense<0.000000e+00> : vector<32x128xf32>
    %104 = tpu.matmul %102, %10, %cst_27 {dimension_numbers = #tpu.dot_dimension_numbers<[1], [0], [0], [1], [0, 0, 1, 1], [], []>} : vector<32x32xf32>, vector<32x128xf32>, vector<32x128xf32> -> vector<32x128xf32>
    %105 = arith.addf %103, %104 : vector<32x128xf32>
    %106 = arith.negf %105 : vector<32x128xf32>
    %107 = math.exp %106 : vector<32x128xf32>
    %cst_28 = arith.constant 1.000000e+00 : f32
    %108 = vector.broadcast %cst_28 : f32 to vector<32x128xf32>
    %109 = arith.addf %108, %107 : vector<32x128xf32>
    %110 = arith.divf %108, %109 : vector<32x128xf32>
    %111 = math.tanh %105 : vector<32x128xf32>
    %112 = vector.extract_strided_slice %110 {offsets = [0, 0], sizes = [32, 32], strides = [1, 1]} : vector<32x128xf32> to vector<32x32xf32>
    %113 = vector.extract_strided_slice %110 {offsets = [0, 32], sizes = [32, 32], strides = [1, 1]} : vector<32x128xf32> to vector<32x32xf32>
    %114 = vector.extract_strided_slice %111 {offsets = [0, 64], sizes = [32, 32], strides = [1, 1]} : vector<32x128xf32> to vector<32x32xf32>
    %115 = vector.extract_strided_slice %110 {offsets = [0, 96], sizes = [32, 32], strides = [1, 1]} : vector<32x128xf32> to vector<32x32xf32>
    %116 = arith.mulf %113, %100 : vector<32x32xf32>
    %117 = arith.mulf %112, %114 : vector<32x32xf32>
    %118 = arith.addf %116, %117 : vector<32x32xf32>
    %119 = math.tanh %118 : vector<32x32xf32>
    %120 = arith.mulf %115, %119 : vector<32x32xf32>
    %c192 = arith.constant 192 : index
    %c0_29 = arith.constant 0 : index
    %121 = vector.load %arg8[%c192, %c0_29] : memref<256x128xf32, #tpu.memory_space<vmem>>, vector<32x128xf32>
    %cst_30 = arith.constant dense<0.000000e+00> : vector<32x128xf32>
    %122 = tpu.matmul %120, %10, %cst_30 {dimension_numbers = #tpu.dot_dimension_numbers<[1], [0], [0], [1], [0, 0, 1, 1], [], []>} : vector<32x32xf32>, vector<32x128xf32>, vector<32x128xf32> -> vector<32x128xf32>
    %123 = arith.addf %121, %122 : vector<32x128xf32>
    %124 = arith.negf %123 : vector<32x128xf32>
    %125 = math.exp %124 : vector<32x128xf32>
    %cst_31 = arith.constant 1.000000e+00 : f32
    %126 = vector.broadcast %cst_31 : f32 to vector<32x128xf32>
    %127 = arith.addf %126, %125 : vector<32x128xf32>
    %128 = arith.divf %126, %127 : vector<32x128xf32>
    %129 = math.tanh %123 : vector<32x128xf32>
    %130 = vector.extract_strided_slice %128 {offsets = [0, 0], sizes = [32, 32], strides = [1, 1]} : vector<32x128xf32> to vector<32x32xf32>
    %131 = vector.extract_strided_slice %128 {offsets = [0, 32], sizes = [32, 32], strides = [1, 1]} : vector<32x128xf32> to vector<32x32xf32>
    %132 = vector.extract_strided_slice %129 {offsets = [0, 64], sizes = [32, 32], strides = [1, 1]} : vector<32x128xf32> to vector<32x32xf32>
    %133 = vector.extract_strided_slice %128 {offsets = [0, 96], sizes = [32, 32], strides = [1, 1]} : vector<32x128xf32> to vector<32x32xf32>
    %134 = arith.mulf %131, %118 : vector<32x32xf32>
    %135 = arith.mulf %130, %132 : vector<32x32xf32>
    %136 = arith.addf %134, %135 : vector<32x32xf32>
    %137 = math.tanh %136 : vector<32x32xf32>
    %138 = arith.mulf %133, %137 : vector<32x32xf32>
    %c224 = arith.constant 224 : index
    %c0_32 = arith.constant 0 : index
    %139 = vector.load %arg8[%c224, %c0_32] : memref<256x128xf32, #tpu.memory_space<vmem>>, vector<32x128xf32>
    %cst_33 = arith.constant dense<0.000000e+00> : vector<32x128xf32>
    %140 = tpu.matmul %138, %10, %cst_33 {dimension_numbers = #tpu.dot_dimension_numbers<[1], [0], [0], [1], [0, 0, 1, 1], [], []>} : vector<32x32xf32>, vector<32x128xf32>, vector<32x128xf32> -> vector<32x128xf32>
    %141 = arith.addf %139, %140 : vector<32x128xf32>
    %142 = arith.negf %141 : vector<32x128xf32>
    %143 = math.exp %142 : vector<32x128xf32>
    %cst_34 = arith.constant 1.000000e+00 : f32
    %144 = vector.broadcast %cst_34 : f32 to vector<32x128xf32>
    %145 = arith.addf %144, %143 : vector<32x128xf32>
    %146 = arith.divf %144, %145 : vector<32x128xf32>
    %147 = math.tanh %141 : vector<32x128xf32>
    %148 = vector.extract_strided_slice %146 {offsets = [0, 0], sizes = [32, 32], strides = [1, 1]} : vector<32x128xf32> to vector<32x32xf32>
    %149 = vector.extract_strided_slice %146 {offsets = [0, 32], sizes = [32, 32], strides = [1, 1]} : vector<32x128xf32> to vector<32x32xf32>
    %150 = vector.extract_strided_slice %147 {offsets = [0, 64], sizes = [32, 32], strides = [1, 1]} : vector<32x128xf32> to vector<32x32xf32>
    %151 = vector.extract_strided_slice %146 {offsets = [0, 96], sizes = [32, 32], strides = [1, 1]} : vector<32x128xf32> to vector<32x32xf32>
    %152 = arith.mulf %149, %136 : vector<32x32xf32>
    %153 = arith.mulf %148, %150 : vector<32x32xf32>
    %154 = arith.addf %152, %153 : vector<32x32xf32>
    %155 = math.tanh %154 : vector<32x32xf32>
    %156 = arith.mulf %151, %155 : vector<32x32xf32>
    %c0_35 = arith.constant 0 : index
    %c0_36 = arith.constant 0 : index
    %157 = vector.load %arg4[%c0_35, %c0_36] : memref<32x128xf32, #tpu.memory_space<vmem>>, vector<32x128xf32>
    %cst_37 = arith.constant dense<0.000000e+00> : vector<32x128xf32>
    %158 = tpu.matmul %156, %157, %cst_37 {dimension_numbers = #tpu.dot_dimension_numbers<[1], [0], [0], [1], [0, 0, 1, 1], [], []>} : vector<32x32xf32>, vector<32x128xf32>, vector<32x128xf32> -> vector<32x128xf32>
    %c0_38 = arith.constant 0 : index
    %c0_39 = arith.constant 0 : index
    %159 = vector.load %arg6[%c0_38, %c0_39] : memref<1x128xf32, #tpu.memory_space<vmem>>, vector<1x128xf32>
    %160 = vector.broadcast %159 : vector<1x128xf32> to vector<32x128xf32>
    %161 = arith.addf %158, %160 : vector<32x128xf32>
    %c0_40 = arith.constant 0 : index
    %c0_41 = arith.constant 0 : index
    %162 = vector.load %arg5[%c0_40, %c0_41] : memref<32x128xf32, #tpu.memory_space<vmem>>, vector<32x128xf32>
    %cst_42 = arith.constant 0.000000e+00 : f32
    %163 = vector.broadcast %cst_42 : f32 to vector<4x32xf32>
    %cst_43 = arith.constant 0.000000e+00 : f32
    %164 = vector.broadcast %cst_43 : f32 to vector<4x32xf32>
    %165 = vector.extract_strided_slice %161 {offsets = [0, 0], sizes = [4, 128], strides = [1, 1]} : vector<32x128xf32> to vector<4x128xf32>
    %cst_44 = arith.constant dense<0.000000e+00> : vector<4x128xf32>
    %166 = tpu.matmul %163, %162, %cst_44 {dimension_numbers = #tpu.dot_dimension_numbers<[1], [0], [0], [1], [0, 0, 1, 1], [], []>} : vector<4x32xf32>, vector<32x128xf32>, vector<4x128xf32> -> vector<4x128xf32>
    %167 = arith.addf %165, %166 : vector<4x128xf32>
    %168 = arith.negf %167 : vector<4x128xf32>
    %169 = math.exp %168 : vector<4x128xf32>
    %cst_45 = arith.constant 1.000000e+00 : f32
    %170 = vector.broadcast %cst_45 : f32 to vector<4x128xf32>
    %171 = arith.addf %170, %169 : vector<4x128xf32>
    %172 = arith.divf %170, %171 : vector<4x128xf32>
    %173 = math.tanh %167 : vector<4x128xf32>
    %174 = vector.extract_strided_slice %172 {offsets = [0, 0], sizes = [4, 32], strides = [1, 1]} : vector<4x128xf32> to vector<4x32xf32>
    %175 = vector.extract_strided_slice %172 {offsets = [0, 32], sizes = [4, 32], strides = [1, 1]} : vector<4x128xf32> to vector<4x32xf32>
    %176 = vector.extract_strided_slice %173 {offsets = [0, 64], sizes = [4, 32], strides = [1, 1]} : vector<4x128xf32> to vector<4x32xf32>
    %177 = vector.extract_strided_slice %172 {offsets = [0, 96], sizes = [4, 32], strides = [1, 1]} : vector<4x128xf32> to vector<4x32xf32>
    %178 = arith.mulf %175, %164 : vector<4x32xf32>
    %179 = arith.mulf %174, %176 : vector<4x32xf32>
    %180 = arith.addf %178, %179 : vector<4x32xf32>
    %181 = math.tanh %180 : vector<4x32xf32>
    %182 = arith.mulf %177, %181 : vector<4x32xf32>
    %183 = vector.extract_strided_slice %161 {offsets = [4, 0], sizes = [4, 128], strides = [1, 1]} : vector<32x128xf32> to vector<4x128xf32>
    %cst_46 = arith.constant dense<0.000000e+00> : vector<4x128xf32>
    %184 = tpu.matmul %182, %162, %cst_46 {dimension_numbers = #tpu.dot_dimension_numbers<[1], [0], [0], [1], [0, 0, 1, 1], [], []>} : vector<4x32xf32>, vector<32x128xf32>, vector<4x128xf32> -> vector<4x128xf32>
    %185 = arith.addf %183, %184 : vector<4x128xf32>
    %186 = arith.negf %185 : vector<4x128xf32>
    %187 = math.exp %186 : vector<4x128xf32>
    %cst_47 = arith.constant 1.000000e+00 : f32
    %188 = vector.broadcast %cst_47 : f32 to vector<4x128xf32>
    %189 = arith.addf %188, %187 : vector<4x128xf32>
    %190 = arith.divf %188, %189 : vector<4x128xf32>
    %191 = math.tanh %185 : vector<4x128xf32>
    %192 = vector.extract_strided_slice %190 {offsets = [0, 0], sizes = [4, 32], strides = [1, 1]} : vector<4x128xf32> to vector<4x32xf32>
    %193 = vector.extract_strided_slice %190 {offsets = [0, 32], sizes = [4, 32], strides = [1, 1]} : vector<4x128xf32> to vector<4x32xf32>
    %194 = vector.extract_strided_slice %191 {offsets = [0, 64], sizes = [4, 32], strides = [1, 1]} : vector<4x128xf32> to vector<4x32xf32>
    %195 = vector.extract_strided_slice %190 {offsets = [0, 96], sizes = [4, 32], strides = [1, 1]} : vector<4x128xf32> to vector<4x32xf32>
    %196 = arith.mulf %193, %180 : vector<4x32xf32>
    %197 = arith.mulf %192, %194 : vector<4x32xf32>
    %198 = arith.addf %196, %197 : vector<4x32xf32>
    %199 = math.tanh %198 : vector<4x32xf32>
    %200 = arith.mulf %195, %199 : vector<4x32xf32>
    %201 = vector.extract_strided_slice %161 {offsets = [8, 0], sizes = [4, 128], strides = [1, 1]} : vector<32x128xf32> to vector<4x128xf32>
    %cst_48 = arith.constant dense<0.000000e+00> : vector<4x128xf32>
    %202 = tpu.matmul %200, %162, %cst_48 {dimension_numbers = #tpu.dot_dimension_numbers<[1], [0], [0], [1], [0, 0, 1, 1], [], []>} : vector<4x32xf32>, vector<32x128xf32>, vector<4x128xf32> -> vector<4x128xf32>
    %203 = arith.addf %201, %202 : vector<4x128xf32>
    %204 = arith.negf %203 : vector<4x128xf32>
    %205 = math.exp %204 : vector<4x128xf32>
    %cst_49 = arith.constant 1.000000e+00 : f32
    %206 = vector.broadcast %cst_49 : f32 to vector<4x128xf32>
    %207 = arith.addf %206, %205 : vector<4x128xf32>
    %208 = arith.divf %206, %207 : vector<4x128xf32>
    %209 = math.tanh %203 : vector<4x128xf32>
    %210 = vector.extract_strided_slice %208 {offsets = [0, 0], sizes = [4, 32], strides = [1, 1]} : vector<4x128xf32> to vector<4x32xf32>
    %211 = vector.extract_strided_slice %208 {offsets = [0, 32], sizes = [4, 32], strides = [1, 1]} : vector<4x128xf32> to vector<4x32xf32>
    %212 = vector.extract_strided_slice %209 {offsets = [0, 64], sizes = [4, 32], strides = [1, 1]} : vector<4x128xf32> to vector<4x32xf32>
    %213 = vector.extract_strided_slice %208 {offsets = [0, 96], sizes = [4, 32], strides = [1, 1]} : vector<4x128xf32> to vector<4x32xf32>
    %214 = arith.mulf %211, %198 : vector<4x32xf32>
    %215 = arith.mulf %210, %212 : vector<4x32xf32>
    %216 = arith.addf %214, %215 : vector<4x32xf32>
    %217 = math.tanh %216 : vector<4x32xf32>
    %218 = arith.mulf %213, %217 : vector<4x32xf32>
    %219 = vector.extract_strided_slice %161 {offsets = [12, 0], sizes = [4, 128], strides = [1, 1]} : vector<32x128xf32> to vector<4x128xf32>
    %cst_50 = arith.constant dense<0.000000e+00> : vector<4x128xf32>
    %220 = tpu.matmul %218, %162, %cst_50 {dimension_numbers = #tpu.dot_dimension_numbers<[1], [0], [0], [1], [0, 0, 1, 1], [], []>} : vector<4x32xf32>, vector<32x128xf32>, vector<4x128xf32> -> vector<4x128xf32>
    %221 = arith.addf %219, %220 : vector<4x128xf32>
    %222 = arith.negf %221 : vector<4x128xf32>
    %223 = math.exp %222 : vector<4x128xf32>
    %cst_51 = arith.constant 1.000000e+00 : f32
    %224 = vector.broadcast %cst_51 : f32 to vector<4x128xf32>
    %225 = arith.addf %224, %223 : vector<4x128xf32>
    %226 = arith.divf %224, %225 : vector<4x128xf32>
    %227 = math.tanh %221 : vector<4x128xf32>
    %228 = vector.extract_strided_slice %226 {offsets = [0, 0], sizes = [4, 32], strides = [1, 1]} : vector<4x128xf32> to vector<4x32xf32>
    %229 = vector.extract_strided_slice %226 {offsets = [0, 32], sizes = [4, 32], strides = [1, 1]} : vector<4x128xf32> to vector<4x32xf32>
    %230 = vector.extract_strided_slice %227 {offsets = [0, 64], sizes = [4, 32], strides = [1, 1]} : vector<4x128xf32> to vector<4x32xf32>
    %231 = vector.extract_strided_slice %226 {offsets = [0, 96], sizes = [4, 32], strides = [1, 1]} : vector<4x128xf32> to vector<4x32xf32>
    %232 = arith.mulf %229, %216 : vector<4x32xf32>
    %233 = arith.mulf %228, %230 : vector<4x32xf32>
    %234 = arith.addf %232, %233 : vector<4x32xf32>
    %235 = math.tanh %234 : vector<4x32xf32>
    %236 = arith.mulf %231, %235 : vector<4x32xf32>
    %237 = vector.extract_strided_slice %161 {offsets = [16, 0], sizes = [4, 128], strides = [1, 1]} : vector<32x128xf32> to vector<4x128xf32>
    %cst_52 = arith.constant dense<0.000000e+00> : vector<4x128xf32>
    %238 = tpu.matmul %236, %162, %cst_52 {dimension_numbers = #tpu.dot_dimension_numbers<[1], [0], [0], [1], [0, 0, 1, 1], [], []>} : vector<4x32xf32>, vector<32x128xf32>, vector<4x128xf32> -> vector<4x128xf32>
    %239 = arith.addf %237, %238 : vector<4x128xf32>
    %240 = arith.negf %239 : vector<4x128xf32>
    %241 = math.exp %240 : vector<4x128xf32>
    %cst_53 = arith.constant 1.000000e+00 : f32
    %242 = vector.broadcast %cst_53 : f32 to vector<4x128xf32>
    %243 = arith.addf %242, %241 : vector<4x128xf32>
    %244 = arith.divf %242, %243 : vector<4x128xf32>
    %245 = math.tanh %239 : vector<4x128xf32>
    %246 = vector.extract_strided_slice %244 {offsets = [0, 0], sizes = [4, 32], strides = [1, 1]} : vector<4x128xf32> to vector<4x32xf32>
    %247 = vector.extract_strided_slice %244 {offsets = [0, 32], sizes = [4, 32], strides = [1, 1]} : vector<4x128xf32> to vector<4x32xf32>
    %248 = vector.extract_strided_slice %245 {offsets = [0, 64], sizes = [4, 32], strides = [1, 1]} : vector<4x128xf32> to vector<4x32xf32>
    %249 = vector.extract_strided_slice %244 {offsets = [0, 96], sizes = [4, 32], strides = [1, 1]} : vector<4x128xf32> to vector<4x32xf32>
    %250 = arith.mulf %247, %234 : vector<4x32xf32>
    %251 = arith.mulf %246, %248 : vector<4x32xf32>
    %252 = arith.addf %250, %251 : vector<4x32xf32>
    %253 = math.tanh %252 : vector<4x32xf32>
    %254 = arith.mulf %249, %253 : vector<4x32xf32>
    %255 = vector.extract_strided_slice %161 {offsets = [20, 0], sizes = [4, 128], strides = [1, 1]} : vector<32x128xf32> to vector<4x128xf32>
    %cst_54 = arith.constant dense<0.000000e+00> : vector<4x128xf32>
    %256 = tpu.matmul %254, %162, %cst_54 {dimension_numbers = #tpu.dot_dimension_numbers<[1], [0], [0], [1], [0, 0, 1, 1], [], []>} : vector<4x32xf32>, vector<32x128xf32>, vector<4x128xf32> -> vector<4x128xf32>
    %257 = arith.addf %255, %256 : vector<4x128xf32>
    %258 = arith.negf %257 : vector<4x128xf32>
    %259 = math.exp %258 : vector<4x128xf32>
    %cst_55 = arith.constant 1.000000e+00 : f32
    %260 = vector.broadcast %cst_55 : f32 to vector<4x128xf32>
    %261 = arith.addf %260, %259 : vector<4x128xf32>
    %262 = arith.divf %260, %261 : vector<4x128xf32>
    %263 = math.tanh %257 : vector<4x128xf32>
    %264 = vector.extract_strided_slice %262 {offsets = [0, 0], sizes = [4, 32], strides = [1, 1]} : vector<4x128xf32> to vector<4x32xf32>
    %265 = vector.extract_strided_slice %262 {offsets = [0, 32], sizes = [4, 32], strides = [1, 1]} : vector<4x128xf32> to vector<4x32xf32>
    %266 = vector.extract_strided_slice %263 {offsets = [0, 64], sizes = [4, 32], strides = [1, 1]} : vector<4x128xf32> to vector<4x32xf32>
    %267 = vector.extract_strided_slice %262 {offsets = [0, 96], sizes = [4, 32], strides = [1, 1]} : vector<4x128xf32> to vector<4x32xf32>
    %268 = arith.mulf %265, %252 : vector<4x32xf32>
    %269 = arith.mulf %264, %266 : vector<4x32xf32>
    %270 = arith.addf %268, %269 : vector<4x32xf32>
    %271 = math.tanh %270 : vector<4x32xf32>
    %272 = arith.mulf %267, %271 : vector<4x32xf32>
    %273 = vector.extract_strided_slice %161 {offsets = [24, 0], sizes = [4, 128], strides = [1, 1]} : vector<32x128xf32> to vector<4x128xf32>
    %cst_56 = arith.constant dense<0.000000e+00> : vector<4x128xf32>
    %274 = tpu.matmul %272, %162, %cst_56 {dimension_numbers = #tpu.dot_dimension_numbers<[1], [0], [0], [1], [0, 0, 1, 1], [], []>} : vector<4x32xf32>, vector<32x128xf32>, vector<4x128xf32> -> vector<4x128xf32>
    %275 = arith.addf %273, %274 : vector<4x128xf32>
    %276 = arith.negf %275 : vector<4x128xf32>
    %277 = math.exp %276 : vector<4x128xf32>
    %cst_57 = arith.constant 1.000000e+00 : f32
    %278 = vector.broadcast %cst_57 : f32 to vector<4x128xf32>
    %279 = arith.addf %278, %277 : vector<4x128xf32>
    %280 = arith.divf %278, %279 : vector<4x128xf32>
    %281 = math.tanh %275 : vector<4x128xf32>
    %282 = vector.extract_strided_slice %280 {offsets = [0, 0], sizes = [4, 32], strides = [1, 1]} : vector<4x128xf32> to vector<4x32xf32>
    %283 = vector.extract_strided_slice %280 {offsets = [0, 32], sizes = [4, 32], strides = [1, 1]} : vector<4x128xf32> to vector<4x32xf32>
    %284 = vector.extract_strided_slice %281 {offsets = [0, 64], sizes = [4, 32], strides = [1, 1]} : vector<4x128xf32> to vector<4x32xf32>
    %285 = vector.extract_strided_slice %280 {offsets = [0, 96], sizes = [4, 32], strides = [1, 1]} : vector<4x128xf32> to vector<4x32xf32>
    %286 = arith.mulf %283, %270 : vector<4x32xf32>
    %287 = arith.mulf %282, %284 : vector<4x32xf32>
    %288 = arith.addf %286, %287 : vector<4x32xf32>
    %289 = math.tanh %288 : vector<4x32xf32>
    %290 = arith.mulf %285, %289 : vector<4x32xf32>
    %291 = vector.extract_strided_slice %161 {offsets = [28, 0], sizes = [4, 128], strides = [1, 1]} : vector<32x128xf32> to vector<4x128xf32>
    %cst_58 = arith.constant dense<0.000000e+00> : vector<4x128xf32>
    %292 = tpu.matmul %290, %162, %cst_58 {dimension_numbers = #tpu.dot_dimension_numbers<[1], [0], [0], [1], [0, 0, 1, 1], [], []>} : vector<4x32xf32>, vector<32x128xf32>, vector<4x128xf32> -> vector<4x128xf32>
    %293 = arith.addf %291, %292 : vector<4x128xf32>
    %294 = arith.negf %293 : vector<4x128xf32>
    %295 = math.exp %294 : vector<4x128xf32>
    %cst_59 = arith.constant 1.000000e+00 : f32
    %296 = vector.broadcast %cst_59 : f32 to vector<4x128xf32>
    %297 = arith.addf %296, %295 : vector<4x128xf32>
    %298 = arith.divf %296, %297 : vector<4x128xf32>
    %299 = math.tanh %293 : vector<4x128xf32>
    %300 = vector.extract_strided_slice %298 {offsets = [0, 0], sizes = [4, 32], strides = [1, 1]} : vector<4x128xf32> to vector<4x32xf32>
    %301 = vector.extract_strided_slice %298 {offsets = [0, 32], sizes = [4, 32], strides = [1, 1]} : vector<4x128xf32> to vector<4x32xf32>
    %302 = vector.extract_strided_slice %299 {offsets = [0, 64], sizes = [4, 32], strides = [1, 1]} : vector<4x128xf32> to vector<4x32xf32>
    %303 = vector.extract_strided_slice %298 {offsets = [0, 96], sizes = [4, 32], strides = [1, 1]} : vector<4x128xf32> to vector<4x32xf32>
    %304 = arith.mulf %301, %288 : vector<4x32xf32>
    %305 = arith.mulf %300, %302 : vector<4x32xf32>
    %306 = arith.addf %304, %305 : vector<4x32xf32>
    %307 = math.tanh %306 : vector<4x32xf32>
    %308 = arith.mulf %303, %307 : vector<4x32xf32>
    %c0_60 = arith.constant 0 : index
    %c0_61 = arith.constant 0 : index
    %c0_62 = arith.constant 0 : index
    %309 = vector.load %arg7[%c0_60, %c0_61, %c0_62] : memref<1x4x32xf32, #tpu.memory_space<vmem>>, vector<1x4x32xf32>
    %310 = vector.shape_cast %309 : vector<1x4x32xf32> to vector<4x32xf32>
    %311 = vector.shape_cast %308 : vector<4x32xf32> to vector<1x4x32xf32>
    tpu.vector_store %arg7[%c0_60, %c0_61, %c0_62], %311 {strides = array<i32>} : memref<1x4x32xf32, #tpu.memory_space<vmem>>, vector<1x4x32xf32>,
    return
  }
  func.func @transform_0(%arg0: i32) -> (i32, i32, i32) {
    %c0_i32 = arith.constant 0 : i32
    %c0_i32_0 = arith.constant 0 : i32
    %c0_i32_1 = arith.constant 0 : i32
    return %arg0, %c0_i32, %c0_i32_0 : i32, i32, i32
  }
  func.func @transform_1(%arg0: i32) -> (i32, i32) {
    %c0_i32 = arith.constant 0 : i32
    %c0_i32_0 = arith.constant 0 : i32
    %c0_i32_1 = arith.constant 0 : i32
    return %c0_i32, %c0_i32_0 : i32, i32
  }
  func.func @transform_2(%arg0: i32) -> (i32, i32) {
    %c0_i32 = arith.constant 0 : i32
    %c0_i32_0 = arith.constant 0 : i32
    %c0_i32_1 = arith.constant 0 : i32
    return %c0_i32, %c0_i32_0 : i32, i32
  }
  func.func @transform_3(%arg0: i32) -> (i32, i32) {
    %c0_i32 = arith.constant 0 : i32
    %c0_i32_0 = arith.constant 0 : i32
    %c0_i32_1 = arith.constant 0 : i32
    return %c0_i32, %c0_i32_0 : i32, i32
  }
  func.func @transform_4(%arg0: i32) -> (i32, i32) {
    %c0_i32 = arith.constant 0 : i32
    %c0_i32_0 = arith.constant 0 : i32
    %c0_i32_1 = arith.constant 0 : i32
    return %c0_i32, %c0_i32_0 : i32, i32
  }
  func.func @transform_5(%arg0: i32) -> (i32, i32) {
    %c0_i32 = arith.constant 0 : i32
    %c0_i32_0 = arith.constant 0 : i32
    %c0_i32_1 = arith.constant 0 : i32
    return %c0_i32, %c0_i32_0 : i32, i32
  }
  func.func @transform_6(%arg0: i32) -> (i32, i32, i32) {
    %c0_i32 = arith.constant 0 : i32
    %c0_i32_0 = arith.constant 0 : i32
    %c0_i32_1 = arith.constant 0 : i32
    return %arg0, %c0_i32, %c0_i32_0 : i32, i32, i32
  }
}

</mosaic_0001>

<bundles_post_ra>
// kernel: rnn_forward.1
= control target key start
LH: loop header
LB: loop body
LE: loop exit
PB: predicated region body
PF: predicated region fallthrough
CT: control target
= control target key end

     0   :  { %v4310_v0 = vmov 0   ;;  %v55_v34 = vlaneseq  ;;  %vm257_vm0 = vcmask 523264   ;;  %v4311_v38 = vmov 0.0   ;;  %s4313_s8 = smov 32   ;;  %s5027_s0 = inlined_call_operand.vmem [shape: s32[1,256,1], index: 0, kind: input, shape index: {}]   ;;  %s5028_s1 = inlined_call_operand.vmem [shape: f32[64,128], index: 1, kind: input, shape index: {}]   ;;  %s5029_s2 = inlined_call_operand.vmem [shape: f32[32,128], index: 2, kind: input, shape index: {}]   ;;  %s5030_s3 = inlined_call_operand.vmem [shape: f32[32,128], index: 3, kind: input, shape index: {}]   ;;  %s5031_s4 = inlined_call_operand.vmem [shape: f32[32,128], index: 4, kind: input, shape index: {}]   ;;  %s5032_s5 = inlined_call_operand.vmem [shape: f32[1,128], index: 5, kind: input, shape index: {}]   ;;  %s5033_s6 = inlined_call_operand.vmem [shape: f32[1,4,32], index: 6, kind: output, shape index: {}]  }
   0x1   :  { %3989 = vset.pattern.permute.xlu1 %v4310_v0  ;;  %3988 = vset.pattern.permute.xlu0 %v4310_v0  ;;  %v25_v1 = vld [vmem:[%s5027_s0 + $0x10] sm:$0xff]  ;;  %v23_v2 = vld [vmem:[%s5027_s0] sm:$0xff]  ;;  %v26_v3 = vld [vmem:[%s5027_s0 + $0x18] sm:$0xff] }
   0x2   :  { %64 = vperm.xlu1 %3989, %v25_v1   ;;  %58 = vperm.xlu0 %3988, %v23_v2   ;;  %v24_v4 = vld [vmem:[%s5027_s0 + $0x8] sm:$0xff]  ;;  %v27_v6 = vld [vmem:[%s5027_s0 + $0x20] sm:$0xff]  ;;  %v251_v9 = vld [vmem:[%s5028_s1 + $0x10] sm:$0xff]  ;;  %v4438_v35 = vand.u32 127, %v55_v34 }
   0x3   :  { %v28_v5 = vld [vmem:[%s5027_s0 + $0x28] sm:$0xff]  ;;  %v249_v7 = vld [vmem:[%s5028_s1] sm:$0xff]  ;;  %v252_v11 = vld [vmem:[%s5028_s1 + $0x18] sm:$0xff] }
   0x4   :  { %v250_v8 = vld [vmem:[%s5028_s1 + $0x8] sm:$0xff]  ;;  %v3810_v12 = vpack.c.bf16 %v252_v11, %v251_v9  ;;  %v253_v13 = vld [vmem:[%s5028_s1 + $0x20] sm:$0xff]  ;;  %v30_v15 = vld [vmem:[%s5027_s0 + $0x38] sm:$0xff] }
   0x5   :  { %v3806_v10 = vpack.c.bf16 %v250_v8, %v249_v7  ;;  %v254_v14 = vld [vmem:[%s5028_s1 + $0x28] sm:$0xff]  ;;  %v29_v16 = vld [vmem:[%s5027_s0 + $0x30] sm:$0xff]  ;;  %v256_v19 = vld [vmem:[%s5028_s1 + $0x38] sm:$0xff] }
   0x6   :  { %67 = vperm.xlu1 %3989, %v26_v3   ;;  %61 = vperm.xlu0 %3988, %v24_v4   ;;  %v3814_v17 = vpack.c.bf16 %v254_v14, %v253_v13  ;;  %v255_v18 = vld [vmem:[%s5028_s1 + $0x30] sm:$0xff]  ;;  %v32_v20 = vld [vmem:[%s5027_s0 + $0x48] sm:$0xff]  ;;  %v31_v21 = vld [vmem:[%s5027_s0 + $0x40] sm:$0xff] }
   0x7   :  { %3807 = vmatprep.subr.bf16.mxu0 %v3806_v10  ;;  %3942 = vmatprep.subr.bf16.mxu1 %v3806_v10  ;;  %v3818_v22 = vpack.c.bf16 %v256_v19, %v255_v18  ;;  %v611_v23 = vld [vmem:[%s5029_s2] sm:$0xff]  ;;  %v612_v24 = vld [vmem:[%s5029_s2 + $0x8] sm:$0xff]  ;;  %v34_v25 = vld [vmem:[%s5027_s0 + $0x58] sm:$0xff] }
   0x8   :  { %3809 = vmatpush3.bf16.msra.mxu0 %v3806_v10  ;;  %3946 = vmatpush3.bf16.msra.mxu1 %v3806_v10  ;;  %v33_v26 = vld [vmem:[%s5027_s0 + $0x50] sm:$0xff]  ;;  %v4417_v27 = vpack.c.bf16 %v612_v24, %v611_v23  ;;  %v36_v28 = vld [vmem:[%s5027_s0 + $0x68] sm:$0xff]  ;;  %v35_v29 = vld [vmem:[%s5027_s0 + $0x60] sm:$0xff] }
   0x9   :  { %3811 = vmatprep.subr.bf16.mxu0 %v3810_v12  ;;  %3943 = vmatprep.subr.bf16.mxu1 %v3810_v12  ;;  %v38_v30 = vld [vmem:[%s5027_s0 + $0x78] sm:$0xff]  ;;  %v37_v31 = vld [vmem:[%s5027_s0 + $0x70] sm:$0xff]  ;;  %v40_v32 = vld [vmem:[%s5027_s0 + $0x88] sm:$0xff] }
   0xa   :  { %73 = vperm.xlu1 %3989, %v28_v5   ;;  %70 = vperm.xlu0 %3988, %v27_v6   ;;  %v39_v33 = vld [vmem:[%s5027_s0 + $0x80] sm:$0xff]  ;;  %v613_v40 = vld [vmem:[%s5029_s2 + $0x10] sm:$0xff]  ;;  %v614_v41 = vld [vmem:[%s5029_s2 + $0x18] sm:$0xff]  ;;  %s4312_s2 = smov 64  }
   0xb   :  { %v4452_v45 = vpack.c.bf16 %v614_v41, %v613_v40 }
   0xc   :  { %3813 = vmatpush3.bf16.msra.mxu0 %v3810_v12  ;;  %3947 = vmatpush3.bf16.msra.mxu1 %v3810_v12 }
   0xd   :  { %3815 = vmatprep.subr.bf16.mxu0 %v3814_v17  ;;  %3944 = vmatprep.subr.bf16.mxu1 %v3814_v17 }
   0xe   :  { %79 = vperm.xlu1 %3989, %v30_v15   ;;  %76 = vperm.xlu0 %3988, %v29_v16  }
  0x10   :  { %3817 = vmatpush3.bf16.msra.mxu0 %v3814_v17  ;;  %3948 = vmatpush3.bf16.msra.mxu1 %v3814_v17 }
  0x11   :  { %3819 = vmatprep.subr.bf16.mxu0 %v3818_v22  ;;  %3945 = vmatprep.subr.bf16.mxu1 %v3818_v22 }
  0x12   :  { %85 = vperm.xlu1 %3989, %v32_v20   ;;  %82 = vperm.xlu0 %3988, %v31_v21  }
  0x14   :  { %3821 = vmatpush3.bf16.msra.mxu0 %v3818_v22  ;;  %3949 = vmatpush3.bf16.msra.mxu1 %v3818_v22 }
  0x15   :  { %3823 = vmatprep.subr.bf16.mxu0 %v4417_v27 }
  0x16   :  { %91 = vperm.xlu1 %3989, %v34_v25   ;;  %88 = vperm.xlu0 %3988, %v33_v26  }
  0x1a   :  { %97 = vperm.xlu1 %3989, %v36_v28   ;;  %94 = vperm.xlu0 %3988, %v35_v29  }
  0x1e   :  { %103 = vperm.xlu1 %3989, %v38_v30   ;;  %100 = vperm.xlu0 %3988, %v37_v31  }
  0x22   :  { %109 = vperm.xlu1 %3989, %v40_v32   ;;  %106 = vperm.xlu0 %3988, %v39_v33  }
  0x81   :  { %v65_v36 = vpop.permute.xlu1 %64  ;;  %v59_v37 = vpop.permute.xlu0 %58 }
  0x82   :  { %vm153_vm1 = vcmp.eq.s32.totalorder %v59_v37, %v4438_v35  ;;  %vm155_vm2 = vcmp.eq.s32.totalorder %v65_v36, %v4438_v35 }
  0x83   :  { %v3232_v39 = vsel %vm153_vm1, 1.0, %v4311_v38  ;;  %v3234_v44 = vsel %vm155_vm2, 1.0, %v4311_v38 }
  0x84   :  { %3544 = vmatprep.mubr.msk.f32.mxu0 %vm257_vm0, %v3232_v39 }
  0x85   :  { %v68_v42 = vpop.permute.xlu1 %67  ;;  %v62_v43 = vpop.permute.xlu0 %61 }
  0x86   :  { %vm154_vm3 = vcmp.eq.s32.totalorder %v62_v43, %v4438_v35  ;;  %vm156_vm4 = vcmp.eq.s32.totalorder %v68_v42, %v4438_v35 }
  0x87   :  { %v3233_v46 = vsel %vm154_vm3, 1.0, %v4311_v38  ;;  %v3235_v49 = vsel %vm156_vm4, 1.0, %v4311_v38  ;;  %vm619_vm4 = vcmask 261120  }
  0x88   :  { %3545 = vmatmul.mubr.msk.f32.vlgmr.msra.gmra.mrb[0].mxu0 %vm257_vm0, %v3233_v46 }
  0x89   :  { %3825 = vmatpush3.bf16.msra.mxu0 %v4417_v27  ;;  %v74_v47 = vpop.permute.xlu1 %73  ;;  %3547 = vmatprep.mubr.msk.f32.mxu0 %vm257_vm0, %v3234_v44  ;;  %v71_v48 = vpop.permute.xlu0 %70 }
  0x8a   :  { %vm157_vm5 = vcmp.eq.s32.totalorder %v71_v48, %v4438_v35  ;;  %3827 = vmatprep.subr.bf16.mxu0 %v4452_v45  ;;  %vm158_vm6 = vcmp.eq.s32.totalorder %v74_v47, %v4438_v35 }
  0x8b   :  { %v3236_v50 = vsel %vm157_vm5, 1.0, %v4311_v38  ;;  %v3237_v53 = vsel %vm158_vm6, 1.0, %v4311_v38 }
  0x8c   :  { %3548 = vmatmul.mubr.msk.f32.gmra.mrb[2].mxu0 %vm257_vm0, %v3235_v49 }
  0x8d   :  { %v80_v51 = vpop.permute.xlu1 %79  ;;  %3550 = vmatprep.mubr.msk.f32.mxu0 %vm257_vm0, %v3236_v50  ;;  %v77_v52 = vpop.permute.xlu0 %76  ;;  %3829 = vmatpush3.bf16.msra.mxu0 %v4452_v45 }
  0x8e   :  { %vm159_vm7 = vcmp.eq.s32.totalorder %v77_v52, %v4438_v35  ;;  %3831 = vmatprep.subr.bf16.mxu0 %v4417_v27  ;;  %vm160_vm8 = vcmp.eq.s32.totalorder %v80_v51, %v4438_v35 }
  0x8f   :  { %v3238_v54 = vsel %vm159_vm7, 1.0, %v4311_v38  ;;  %v3239_v57 = vsel %vm160_vm8, 1.0, %v4311_v38 }
  0x90   :  { %3551 = vmatmul.mubr.msk.f32.gmra.mrb[4].mxu0 %vm257_vm0, %v3237_v53 }
  0x91   :  { %v86_v55 = vpop.permute.xlu1 %85  ;;  %3553 = vmatprep.mubr.msk.f32.mxu0 %vm257_vm0, %v3238_v54  ;;  %v83_v56 = vpop.permute.xlu0 %82 }
  0x92   :  { %vm161_vm9 = vcmp.eq.s32.totalorder %v83_v56, %v4438_v35  ;;  %vm162_vm10 = vcmp.eq.s32.totalorder %v86_v55, %v4438_v35 }
  0x93   :  { %v3240_v58 = vsel %vm161_vm9, 1.0, %v4311_v38  ;;  %v3241_v61 = vsel %vm162_vm10, 1.0, %v4311_v38 }
  0x94   :  { %3554 = vmatmul.mubr.msk.f32.gmra.mrb[6].mxu0 %vm257_vm0, %v3239_v57 }
  0x95   :  { %v92_v59 = vpop.permute.xlu1 %91  ;;  %3556 = vmatprep.mubr.msk.f32.mxu0 %vm257_vm0, %v3240_v58  ;;  %v89_v60 = vpop.permute.xlu0 %88 }
  0x96   :  { %vm163_vm11 = vcmp.eq.s32.totalorder %v89_v60, %v4438_v35  ;;  %vm164_vm12 = vcmp.eq.s32.totalorder %v92_v59, %v4438_v35 }
  0x97   :  { %v3242_v62 = vsel %vm163_vm11, 1.0, %v4311_v38  ;;  %v3243_v1 = vsel %vm164_vm12, 1.0, %v4311_v38 }
  0x98   :  { %3557 = vmatmul.mubr.msk.f32.gmra.mrb[8].mxu0 %vm257_vm0, %v3241_v61 }
  0x99   :  { %v98_v63 = vpop.permute.xlu1 %97  ;;  %3559 = vmatprep.mubr.msk.f32.mxu0 %vm257_vm0, %v3242_v62  ;;  %v95_v0 = vpop.permute.xlu0 %94 }
  0x9a   :  { %vm165_vm13 = vcmp.eq.s32.totalorder %v95_v0, %v4438_v35  ;;  %vm166_vm14 = vcmp.eq.s32.totalorder %v98_v63, %v4438_v35 }
  0x9b   :  { %v3244_v2 = vsel %vm165_vm13, 1.0, %v4311_v38  ;;  %v3245_v5 = vsel %vm166_vm14, 1.0, %v4311_v38 }
  0x9c   :  { %3560 = vmatmul.mubr.msk.f32.gmra.mrb[10].mxu0 %vm257_vm0, %v3243_v1 }
  0x9d   :  { %v104_v3 = vpop.permute.xlu1 %103  ;;  %3562 = vmatprep.mubr.msk.f32.mxu0 %vm257_vm0, %v3244_v2  ;;  %v101_v4 = vpop.permute.xlu0 %100 }
  0x9e   :  { %vm167_vm15 = vcmp.eq.s32.totalorder %v101_v4, %v4438_v35  ;;  %vm168_vm1 = vcmp.eq.s32.totalorder %v104_v3, %v4438_v35 }
  0x9f   :  { %v3246_v6 = vsel %vm167_vm15, 1.0, %v4311_v38  ;;  %v3247_v9 = vsel %vm168_vm1, 1.0, %v4311_v38 }
  0xa0   :  { %3563 = vmatmul.mubr.msk.f32.gmra.mrb[12].mxu0 %vm257_vm0, %v3245_v5 }
  0xa1   :  { %v110_v7 = vpop.permute.xlu1 %109  ;;  %3565 = vmatprep.mubr.msk.f32.mxu0 %vm257_vm0, %v3246_v6  ;;  %v107_v8 = vpop.permute.xlu0 %106 }
  0xa2   :  { %vm169_vm2 = vcmp.eq.s32.totalorder %v107_v8, %v4438_v35  ;;  %vm170_vm3 = vcmp.eq.s32.totalorder %v110_v7, %v4438_v35 }
  0xa3   :  { %v3248_v10 = vsel %vm169_vm2, 1.0, %v4311_v38  ;;  %v3249_v11 = vsel %vm170_vm3, 1.0, %v4311_v38 }
  0xa4   :  { %3566 = vmatmul.mubr.msk.f32.gmra.mrb[14].mxu0 %vm257_vm0, %v3247_v9 }
  0xa5   :  { %3568 = vmatprep.mubr.msk.f32.mxu0 %vm257_vm0, %v3248_v10 }
  0xa8   :  { %3569 = vmatmul.mubr.msk.f32.gmra.mrb[16].mxu0 %vm257_vm0, %v3249_v11 }
  0xa9   :  { %3600 = vmatprep.mubr.f32.mxu0 %v4311_v38 }
  0xac   :  { %3601 = vmatmul.mubr.f32.vlgmr.msra.gmra.mrb[0].mxu0 %v4311_v38 }
  0xad   :  { %3603 = vmatprep.mubr.f32.mxu0 %v4311_v38  ;;  %3833 = vmatpush3.bf16.msra.mxu0 %v4417_v27 }
  0xae   :  { %3835 = vmatprep.subr.bf16.mxu0 %v4452_v45 }
  0xb0   :  { %3604 = vmatmul.mubr.f32.gmra.mrb[2].mxu0 %v4311_v38 }
  0xb1   :  { %3837 = vmatpush3.bf16.msra.mxu0 %v4452_v45 }
  0xb2   :  { %3839 = vmatprep.subr.bf16.mxu0 %v4417_v27 }
 0x17f   :  { %v3602_v12 = vpop.f32.mrb[0].mxu0 }
 0x180   :  { %3990 = vtanh.f32 %v3602_v12  ;;  %v689_v13 = vpop.f32.mrb[1].mxu0  ;;  %v3297_v20 = vmul.f32 -1.442695, %v3602_v12 }
 0x181   :  { %3992 = vtanh.f32 %v689_v13  ;;  %v3296_v21 = vmul.f32 -1.442695, %v689_v13 }
 0x183   :  { %v3605_v14 = vpop.f32.mrb[2].mxu0 }
 0x184   :  { %3994 = vtanh.f32 %v3605_v14  ;;  %v699_v15 = vpop.f32.mrb[3].mxu0  ;;  %v3299_v22 = vmul.f32 -1.442695, %v3605_v14 }
 0x185   :  { %3996 = vtanh.f32 %v699_v15  ;;  %v3298_v23 = vmul.f32 -1.442695, %v699_v15 }
 0x186   :  { %3998 = vpow2.f32 %v3297_v20 }
 0x187   :  { %4000 = vpow2.f32 %v3296_v21 }
 0x188   :  { %4002 = vpow2.f32 %v3299_v22 }
 0x189   :  { %4004 = vpow2.f32 %v3298_v23 }
 0x18a   :  { %v3991_v16 = vpop.eup %3990 }
 0x18b   :  { %v3993_v17 = vpop.eup %3992  ;;  %750 = vrot.lane.b32.xlu1 %v3991_v16, %s4312_s2 }
 0x18c   :  { %748 = vrot.lane.b32.xlu0 %v3993_v17, %s4312_s2 }
 0x18e   :  { %v3995_v18 = vpop.eup %3994 }
 0x18f   :  { %v3997_v19 = vpop.eup %3996  ;;  %754 = vrot.lane.b32.xlu1 %v3995_v18, %s4312_s2 }
 0x190   :  { %752 = vrot.lane.b32.xlu0 %v3997_v19, %s4312_s2  ;;  %v3999_v24 = vpop.eup %3998 }
 0x191   :  { %v4001_v25 = vpop.eup %4000  ;;  %v725_v26 = vadd.f32 1.0, %v3999_v24 }
 0x192   :  { %v4003_v28 = vpop.eup %4002  ;;  %v724_v29 = vadd.f32 1.0, %v4001_v25 }
 0x193   :  { %v4005_v30 = vpop.eup %4004  ;;  %4006 = vrcp.f32 %v725_v26  ;;  %v727_v31 = vadd.f32 1.0, %v4003_v28 }
 0x194   :  { %4008 = vrcp.f32 %v724_v29  ;;  %v726_v32 = vadd.f32 1.0, %v4005_v30 }
 0x195   :  { %4010 = vrcp.f32 %v727_v31 }
 0x196   :  { %4012 = vrcp.f32 %v726_v32 }
 0x19d   :  { %v4007_v33 = vpop.eup %4006 }
 0x19e   :  { %v4009_v36 = vpop.eup %4008  ;;  %v741_v48 = vmul.f32 0.0, %v4007_v33 }
 0x19f   :  { %v4011_v41 = vpop.eup %4010  ;;  %v740_v50 = vmul.f32 0.0, %v4009_v36 }
 0x1a0   :  { %v4013_v43 = vpop.eup %4012  ;;  %v743_v54 = vmul.f32 0.0, %v4011_v41 }
 0x1a1   :  { %v742_v56 = vmul.f32 0.0, %v4013_v43 }
 0x1fd   :  { %v751_v34 = vpop.permute.xlu1 %750 }
 0x1fe   :  { %v761_v37 = vmul.f32 %v4007_v33, %v751_v34  ;;  %v749_v39 = vpop.permute.xlu0 %748 }
 0x1ff   :  { %v760_v40 = vmul.f32 %v4009_v36, %v749_v39 }
 0x200   :  { %770 = vrot.lane.b32.xlu1 %v761_v37, %s4313_s8 }
 0x201   :  { %v755_v42 = vpop.permute.xlu1 %754  ;;  %768 = vrot.lane.b32.xlu0 %v760_v40, %s4313_s8 }
 0x202   :  { %v763_v44 = vmul.f32 %v4011_v41, %v755_v42  ;;  %v753_v46 = vpop.permute.xlu0 %752 }
 0x203   :  { %v762_v47 = vmul.f32 %v4013_v43, %v753_v46 }
 0x204   :  { %774 = vrot.lane.b32.xlu1 %v763_v44, %s4313_s8 }
 0x205   :  { %772 = vrot.lane.b32.xlu0 %v762_v47, %s4313_s8 }
 0x272   :  { %v771_v49 = vpop.permute.xlu1 %770 }
 0x273   :  { %v4522_v51 = vadd.f32 %v771_v49, %v741_v48  ;;  %v769_v52 = vpop.permute.xlu0 %768 }
 0x274   :  { %v4524_v53 = vadd.f32 %v769_v52, %v740_v50 }
 0x275   :  { %4014 = vtanh.f32 %v4522_v51 }
 0x276   :  { %4016 = vtanh.f32 %v4524_v53  ;;  %v775_v55 = vpop.permute.xlu1 %774 }
 0x277   :  { %v4528_v57 = vadd.f32 %v775_v55, %v743_v54  ;;  %v773_v58 = vpop.permute.xlu0 %772 }
 0x278   :  { %v4530_v59 = vadd.f32 %v773_v58, %v742_v56 }
 0x279   :  { %4018 = vtanh.f32 %v4528_v57 }
 0x27a   :  { %4020 = vtanh.f32 %v4530_v59 }
 0x27f   :  { %v4015_v60 = vpop.eup %4014 }
 0x280   :  { %v4017_v61 = vpop.eup %4016  ;;  %794 = vrot.lane.b32.xlu1 %v4015_v60, %s4312_s2 }
 0x281   :  { %792 = vrot.lane.b32.xlu0 %v4017_v61, %s4312_s2 }
 0x283   :  { %v4019_v62 = vpop.eup %4018 }
 0x284   :  { %v4021_v63 = vpop.eup %4020  ;;  %798 = vrot.lane.b32.xlu1 %v4019_v62, %s4312_s2 }
 0x285   :  { %796 = vrot.lane.b32.xlu0 %v4021_v63, %s4312_s2 }
 0x2f2   :  { %v795_v0 = vpop.permute.xlu1 %794 }
 0x2f3   :  { %v805_v1 = vmul.f32 %v4007_v33, %v795_v0  ;;  %v793_v2 = vpop.permute.xlu0 %792 }
 0x2f4   :  { %v804_v3 = vmul.f32 %v4009_v36, %v793_v2 }
 0x2f5   :  { %818 = vrot.lane.b32.xlu1 %v805_v1, %s4313_s8 }
 0x2f6   :  { %v799_v4 = vpop.permute.xlu1 %798  ;;  %816 = vrot.lane.b32.xlu0 %v804_v3, %s4313_s8 }
 0x2f7   :  { %v807_v5 = vmul.f32 %v4011_v41, %v799_v4  ;;  %v797_v6 = vpop.permute.xlu0 %796 }
 0x2f8   :  { %v806_v7 = vmul.f32 %v4013_v43, %v797_v6 }
 0x2f9   :  { %822 = vrot.lane.b32.xlu1 %v807_v5, %s4313_s8 }
 0x2fa   :  { %820 = vrot.lane.b32.xlu0 %v806_v7, %s4313_s8 }
 0x367   :  { %v819_v8 = vpop.permute.xlu1 %818 }
 0x368   :  { %v817_v9 = vpop.permute.xlu0 %816 }
 0x369   :  { %3614 = vmatprep.mubr.msk.f32.mxu0 %vm619_vm4, %v817_v9 }
 0x36a   :  { %3615 = vmatmul.mubr.msk.f32.vlgmr.msra.gmra.mrb[4].mxu0 %vm619_vm4, %v819_v8 }
 0x36b   :  { %3841 = vmatpush3.bf16.msra.mxu0 %v4417_v27  ;;  %v823_v11 = vpop.permute.xlu1 %822 }
 0x36c   :  { %v821_v10 = vpop.permute.xlu0 %820  ;;  %3843 = vmatprep.subr.bf16.mxu0 %v4452_v45 }
 0x36d   :  { %3617 = vmatprep.mubr.msk.f32.mxu0 %vm619_vm4, %v821_v10 }
 0x36e   :  { %3618 = vmatmul.mubr.msk.f32.gmra.mrb[6].mxu0 %vm619_vm4, %v823_v11 }
 0x36f   :  { %3845 = vmatpush3.bf16.msra.mxu0 %v4452_v45 }
 0x370   :  { %3847 = vmatprep.subr.bf16.mxu0 %v4417_v27 }
 0x43d   :  { %v3616_v12 = vpop.f32.mrb[4].mxu0 }
 0x43e   :  { %4022 = vtanh.f32 %v3616_v12  ;;  %v898_v13 = vpop.f32.mrb[5].mxu0  ;;  %v3305_v20 = vmul.f32 -1.442695, %v3616_v12 }
 0x43f   :  { %4024 = vtanh.f32 %v898_v13  ;;  %v3304_v21 = vmul.f32 -1.442695, %v898_v13 }
 0x441   :  { %v3619_v14 = vpop.f32.mrb[6].mxu0 }
 0x442   :  { %4026 = vtanh.f32 %v3619_v14  ;;  %v908_v15 = vpop.f32.mrb[7].mxu0  ;;  %v3307_v22 = vmul.f32 -1.442695, %v3619_v14 }
 0x443   :  { %4028 = vtanh.f32 %v908_v15  ;;  %v3306_v23 = vmul.f32 -1.442695, %v908_v15 }
 0x444   :  { %4030 = vpow2.f32 %v3305_v20 }
 0x445   :  { %4032 = vpow2.f32 %v3304_v21 }
 0x446   :  { %4034 = vpow2.f32 %v3307_v22 }
 0x447   :  { %4036 = vpow2.f32 %v3306_v23 }
 0x448   :  { %v4023_v16 = vpop.eup %4022 }
 0x449   :  { %v4025_v17 = vpop.eup %4024  ;;  %959 = vrot.lane.b32.xlu1 %v4023_v16, %s4312_s2 }
 0x44a   :  { %957 = vrot.lane.b32.xlu0 %v4025_v17, %s4312_s2 }
 0x44c   :  { %v4027_v18 = vpop.eup %4026 }
 0x44d   :  { %v4029_v19 = vpop.eup %4028  ;;  %963 = vrot.lane.b32.xlu1 %v4027_v18, %s4312_s2 }
 0x44e   :  { %961 = vrot.lane.b32.xlu0 %v4029_v19, %s4312_s2  ;;  %v4031_v24 = vpop.eup %4030 }
 0x44f   :  { %v4033_v25 = vpop.eup %4032  ;;  %v934_v26 = vadd.f32 1.0, %v4031_v24 }
 0x450   :  { %v4035_v28 = vpop.eup %4034  ;;  %v933_v29 = vadd.f32 1.0, %v4033_v25 }
 0x451   :  { %v4037_v30 = vpop.eup %4036  ;;  %4038 = vrcp.f32 %v934_v26  ;;  %v936_v31 = vadd.f32 1.0, %v4035_v28 }
 0x452   :  { %4040 = vrcp.f32 %v933_v29  ;;  %v935_v32 = vadd.f32 1.0, %v4037_v30 }
 0x453   :  { %4042 = vrcp.f32 %v936_v31 }
 0x454   :  { %4044 = vrcp.f32 %v935_v32 }
 0x45b   :  { %v4039_v33 = vpop.eup %4038 }
 0x45c   :  { %v4041_v36 = vpop.eup %4040  ;;  %v950_v48 = vmul.f32 %v4039_v33, %v4522_v51 }
 0x45d   :  { %v4043_v41 = vpop.eup %4042  ;;  %v949_v50 = vmul.f32 %v4041_v36, %v4524_v53 }
 0x45e   :  { %v4045_v43 = vpop.eup %4044  ;;  %v952_v56 = vmul.f32 %v4043_v41, %v4528_v57 }
 0x45f   :  { %v951_v60 = vmul.f32 %v4045_v43, %v4530_v59 }
 0x4bb   :  { %v960_v34 = vpop.permute.xlu1 %959 }
 0x4bc   :  { %v970_v37 = vmul.f32 %v4039_v33, %v960_v34  ;;  %v958_v39 = vpop.permute.xlu0 %957 }
 0x4bd   :  { %v969_v40 = vmul.f32 %v4041_v36, %v958_v39 }
 0x4be   :  { %979 = vrot.lane.b32.xlu1 %v970_v37, %s4313_s8 }
 0x4bf   :  { %v964_v42 = vpop.permute.xlu1 %963  ;;  %977 = vrot.lane.b32.xlu0 %v969_v40, %s4313_s8 }
 0x4c0   :  { %v972_v44 = vmul.f32 %v4043_v41, %v964_v42  ;;  %v962_v46 = vpop.permute.xlu0 %961 }
 0x4c1   :  { %v971_v47 = vmul.f32 %v4045_v43, %v962_v46 }
 0x4c2   :  { %983 = vrot.lane.b32.xlu1 %v972_v44, %s4313_s8 }
 0x4c3   :  { %981 = vrot.lane.b32.xlu0 %v971_v47, %s4313_s8 }
 0x530   :  { %v980_v49 = vpop.permute.xlu1 %979 }
 0x531   :  { %v4560_v52 = vadd.f32 %v980_v49, %v950_v48  ;;  %v978_v54 = vpop.permute.xlu0 %977 }
 0x532   :  { %v4562_v55 = vadd.f32 %v978_v54, %v949_v50 }
 0x533   :  { %4046 = vtanh.f32 %v4560_v52 }
 0x534   :  { %4048 = vtanh.f32 %v4562_v55  ;;  %v984_v58 = vpop.permute.xlu1 %983 }
 0x535   :  { %v4568_v61 = vadd.f32 %v984_v58, %v952_v56  ;;  %v982_v51 = vpop.permute.xlu0 %981 }
 0x536   :  { %v4570_v62 = vadd.f32 %v982_v51, %v951_v60 }
 0x537   :  { %4050 = vtanh.f32 %v4568_v61 }
 0x538   :  { %4052 = vtanh.f32 %v4570_v62 }
 0x53d   :  { %v4047_v53 = vpop.eup %4046 }
 0x53e   :  { %v4049_v63 = vpop.eup %4048  ;;  %1003 = vrot.lane.b32.xlu1 %v4047_v53, %s4312_s2 }
 0x53f   :  { %1001 = vrot.lane.b32.xlu0 %v4049_v63, %s4312_s2 }
 0x541   :  { %v4051_v57 = vpop.eup %4050 }
 0x542   :  { %v4053_v0 = vpop.eup %4052  ;;  %1007 = vrot.lane.b32.xlu1 %v4051_v57, %s4312_s2 }
 0x543   :  { %1005 = vrot.lane.b32.xlu0 %v4053_v0, %s4312_s2 }
 0x5b0   :  { %v1004_v59 = vpop.permute.xlu1 %1003 }
 0x5b1   :  { %v1014_v1 = vmul.f32 %v4039_v33, %v1004_v59  ;;  %v1002_v2 = vpop.permute.xlu0 %1001 }
 0x5b2   :  { %v1013_v3 = vmul.f32 %v4041_v36, %v1002_v2 }
 0x5b3   :  { %1027 = vrot.lane.b32.xlu1 %v1014_v1, %s4313_s8 }
 0x5b4   :  { %v1008_v4 = vpop.permute.xlu1 %1007  ;;  %1025 = vrot.lane.b32.xlu0 %v1013_v3, %s4313_s8 }
 0x5b5   :  { %v1016_v5 = vmul.f32 %v4043_v41, %v1008_v4  ;;  %v1006_v6 = vpop.permute.xlu0 %1005 }
 0x5b6   :  { %v1015_v7 = vmul.f32 %v4045_v43, %v1006_v6 }
 0x5b7   :  { %1031 = vrot.lane.b32.xlu1 %v1016_v5, %s4313_s8 }
 0x5b8   :  { %1029 = vrot.lane.b32.xlu0 %v1015_v7, %s4313_s8 }
 0x625   :  { %v1028_v8 = vpop.permute.xlu1 %1027 }
 0x626   :  { %v1026_v9 = vpop.permute.xlu0 %1025 }
 0x627   :  { %3628 = vmatprep.mubr.msk.f32.mxu0 %vm619_vm4, %v1026_v9 }
 0x628   :  { %3629 = vmatmul.mubr.msk.f32.vlgmr.msra.gmra.mrb[8].mxu0 %vm619_vm4, %v1028_v8 }
 0x629   :  { %3849 = vmatpush3.bf16.msra.mxu0 %v4417_v27  ;;  %v1032_v11 = vpop.permute.xlu1 %1031 }
 0x62a   :  { %v1030_v10 = vpop.permute.xlu0 %1029  ;;  %3851 = vmatprep.subr.bf16.mxu0 %v4452_v45 }
 0x62b   :  { %3631 = vmatprep.mubr.msk.f32.mxu0 %vm619_vm4, %v1030_v10 }
 0x62c   :  { %3632 = vmatmul.mubr.msk.f32.gmra.mrb[10].mxu0 %vm619_vm4, %v1032_v11 }
 0x62d   :  { %3853 = vmatpush3.bf16.msra.mxu0 %v4452_v45 }
 0x62e   :  { %3855 = vmatprep.subr.bf16.mxu0 %v4417_v27 }
 0x6fb   :  { %v3630_v12 = vpop.f32.mrb[8].mxu0 }
 0x6fc   :  { %4054 = vtanh.f32 %v3630_v12  ;;  %v1107_v13 = vpop.f32.mrb[9].mxu0  ;;  %v3313_v20 = vmul.f32 -1.442695, %v3630_v12 }
 0x6fd   :  { %4056 = vtanh.f32 %v1107_v13  ;;  %v3312_v21 = vmul.f32 -1.442695, %v1107_v13 }
 0x6ff   :  { %v3633_v14 = vpop.f32.mrb[10].mxu0 }
 0x700   :  { %4058 = vtanh.f32 %v3633_v14  ;;  %v1117_v15 = vpop.f32.mrb[11].mxu0  ;;  %v3315_v22 = vmul.f32 -1.442695, %v3633_v14 }
 0x701   :  { %4060 = vtanh.f32 %v1117_v15  ;;  %v3314_v23 = vmul.f32 -1.442695, %v1117_v15 }
 0x702   :  { %4062 = vpow2.f32 %v3313_v20 }
 0x703   :  { %4064 = vpow2.f32 %v3312_v21 }
 0x704   :  { %4066 = vpow2.f32 %v3315_v22 }
 0x705   :  { %4068 = vpow2.f32 %v3314_v23 }
 0x706   :  { %v4055_v16 = vpop.eup %4054 }
 0x707   :  { %v4057_v17 = vpop.eup %4056  ;;  %1168 = vrot.lane.b32.xlu1 %v4055_v16, %s4312_s2 }
 0x708   :  { %1166 = vrot.lane.b32.xlu0 %v4057_v17, %s4312_s2 }
 0x70a   :  { %v4059_v18 = vpop.eup %4058 }
 0x70b   :  { %v4061_v19 = vpop.eup %4060  ;;  %1172 = vrot.lane.b32.xlu1 %v4059_v18, %s4312_s2 }
 0x70c   :  { %1170 = vrot.lane.b32.xlu0 %v4061_v19, %s4312_s2  ;;  %v4063_v24 = vpop.eup %4062 }
 0x70d   :  { %v4065_v25 = vpop.eup %4064  ;;  %v1143_v26 = vadd.f32 1.0, %v4063_v24 }
 0x70e   :  { %v4067_v28 = vpop.eup %4066  ;;  %v1142_v29 = vadd.f32 1.0, %v4065_v25 }
 0x70f   :  { %v4069_v30 = vpop.eup %4068  ;;  %4070 = vrcp.f32 %v1143_v26  ;;  %v1145_v31 = vadd.f32 1.0, %v4067_v28 }
 0x710   :  { %4072 = vrcp.f32 %v1142_v29  ;;  %v1144_v32 = vadd.f32 1.0, %v4069_v30 }
 0x711   :  { %4074 = vrcp.f32 %v1145_v31 }
 0x712   :  { %4076 = vrcp.f32 %v1144_v32 }
 0x719   :  { %v4071_v33 = vpop.eup %4070 }
 0x71a   :  { %v4073_v36 = vpop.eup %4072  ;;  %v1159_v48 = vmul.f32 %v4071_v33, %v4560_v52 }
 0x71b   :  { %v4075_v41 = vpop.eup %4074  ;;  %v1158_v50 = vmul.f32 %v4073_v36, %v4562_v55 }
 0x71c   :  { %v4077_v43 = vpop.eup %4076  ;;  %v1161_v60 = vmul.f32 %v4075_v41, %v4568_v61 }
 0x71d   :  { %v1160_v53 = vmul.f32 %v4077_v43, %v4570_v62 }
 0x779   :  { %v1169_v34 = vpop.permute.xlu1 %1168 }
 0x77a   :  { %v1179_v37 = vmul.f32 %v4071_v33, %v1169_v34  ;;  %v1167_v39 = vpop.permute.xlu0 %1166 }
 0x77b   :  { %v1178_v40 = vmul.f32 %v4073_v36, %v1167_v39 }
 0x77c   :  { %1188 = vrot.lane.b32.xlu1 %v1179_v37, %s4313_s8 }
 0x77d   :  { %v1173_v42 = vpop.permute.xlu1 %1172  ;;  %1186 = vrot.lane.b32.xlu0 %v1178_v40, %s4313_s8 }
 0x77e   :  { %v1181_v44 = vmul.f32 %v4075_v41, %v1173_v42  ;;  %v1171_v46 = vpop.permute.xlu0 %1170 }
 0x77f   :  { %v1180_v47 = vmul.f32 %v4077_v43, %v1171_v46 }
 0x780   :  { %1192 = vrot.lane.b32.xlu1 %v1181_v44, %s4313_s8 }
 0x781   :  { %1190 = vrot.lane.b32.xlu0 %v1180_v47, %s4313_s8 }
 0x7ee   :  { %v1189_v49 = vpop.permute.xlu1 %1188 }
 0x7ef   :  { %v4600_v54 = vadd.f32 %v1189_v49, %v1159_v48  ;;  %v1187_v56 = vpop.permute.xlu0 %1186 }
 0x7f0   :  { %v4602_v58 = vadd.f32 %v1187_v56, %v1158_v50 }
 0x7f1   :  { %4078 = vtanh.f32 %v4600_v54 }
 0x7f2   :  { %4080 = vtanh.f32 %v4602_v58  ;;  %v1193_v51 = vpop.permute.xlu1 %1192 }
 0x7f3   :  { %v4608_v63 = vadd.f32 %v1193_v51, %v1161_v60  ;;  %v1191_v52 = vpop.permute.xlu0 %1190 }
 0x7f4   :  { %v4610_v57 = vadd.f32 %v1191_v52, %v1160_v53 }
 0x7f5   :  { %4082 = vtanh.f32 %v4608_v63 }
 0x7f6   :  { %4084 = vtanh.f32 %v4610_v57 }
 0x7fb   :  { %v4079_v55 = vpop.eup %4078 }
 0x7fc   :  { %v4081_v0 = vpop.eup %4080  ;;  %1212 = vrot.lane.b32.xlu1 %v4079_v55, %s4312_s2 }
 0x7fd   :  { %1210 = vrot.lane.b32.xlu0 %v4081_v0, %s4312_s2 }
 0x7ff   :  { %v4083_v61 = vpop.eup %4082 }
 0x800   :  { %v4085_v59 = vpop.eup %4084  ;;  %1216 = vrot.lane.b32.xlu1 %v4083_v61, %s4312_s2 }
 0x801   :  { %1214 = vrot.lane.b32.xlu0 %v4085_v59, %s4312_s2 }
 0x86e   :  { %v1213_v62 = vpop.permute.xlu1 %1212 }
 0x86f   :  { %v1223_v1 = vmul.f32 %v4071_v33, %v1213_v62  ;;  %v1211_v2 = vpop.permute.xlu0 %1210 }
 0x870   :  { %v1222_v3 = vmul.f32 %v4073_v36, %v1211_v2 }
 0x871   :  { %1236 = vrot.lane.b32.xlu1 %v1223_v1, %s4313_s8  ;;  %v41_v1 = vld [vmem:[%s5027_s0 + $0x90] sm:$0xff] }
 0x872   :  { %v1217_v4 = vpop.permute.xlu1 %1216  ;;  %1234 = vrot.lane.b32.xlu0 %v1222_v3, %s4313_s8 }
 0x873   :  { %v1225_v5 = vmul.f32 %v4075_v41, %v1217_v4  ;;  %v1215_v6 = vpop.permute.xlu0 %1214 }
 0x874   :  { %v1224_v7 = vmul.f32 %v4077_v43, %v1215_v6 }
 0x875   :  { %1240 = vrot.lane.b32.xlu1 %v1225_v5, %s4313_s8 }
 0x876   :  { %1238 = vrot.lane.b32.xlu0 %v1224_v7, %s4313_s8 }
 0x8e3   :  { %v1237_v8 = vpop.permute.xlu1 %1236 }
 0x8e4   :  { %v1235_v9 = vpop.permute.xlu0 %1234 }
 0x8e5   :  { %3642 = vmatprep.mubr.msk.f32.mxu0 %vm619_vm4, %v1235_v9 }
 0x8e6   :  { %3643 = vmatmul.mubr.msk.f32.vlgmr.msra.gmra.mrb[12].mxu0 %vm619_vm4, %v1237_v8 }
 0x8e7   :  { %3857 = vmatpush3.bf16.msra.mxu0 %v4417_v27  ;;  %v1241_v11 = vpop.permute.xlu1 %1240 }
 0x8e8   :  { %v1239_v10 = vpop.permute.xlu0 %1238  ;;  %3859 = vmatprep.subr.bf16.mxu0 %v4452_v45 }
 0x8e9   :  { %3645 = vmatprep.mubr.msk.f32.mxu0 %vm619_vm4, %v1239_v10 }
 0x8ea   :  { %3646 = vmatmul.mubr.msk.f32.gmra.mrb[14].mxu0 %vm619_vm4, %v1241_v11 }
 0x8eb   :  { %3861 = vmatpush3.bf16.msra.mxu0 %v4452_v45 }
 0x8ec   :  { %3863 = vmatprep.subr.bf16.mxu0 %v4417_v27 }
 0x9b9   :  { %v3644_v12 = vpop.f32.mrb[12].mxu0 }
 0x9ba   :  { %4086 = vtanh.f32 %v3644_v12  ;;  %v1316_v13 = vpop.f32.mrb[13].mxu0  ;;  %v3321_v20 = vmul.f32 -1.442695, %v3644_v12 }
 0x9bb   :  { %4088 = vtanh.f32 %v1316_v13  ;;  %v3320_v21 = vmul.f32 -1.442695, %v1316_v13 }
 0x9bd   :  { %v3647_v14 = vpop.f32.mrb[14].mxu0 }
 0x9be   :  { %4090 = vtanh.f32 %v3647_v14  ;;  %v1326_v15 = vpop.f32.mrb[15].mxu0  ;;  %v3323_v22 = vmul.f32 -1.442695, %v3647_v14 }
 0x9bf   :  { %4092 = vtanh.f32 %v1326_v15  ;;  %v3322_v23 = vmul.f32 -1.442695, %v1326_v15 }
 0x9c0   :  { %4094 = vpow2.f32 %v3321_v20 }
 0x9c1   :  { %4096 = vpow2.f32 %v3320_v21 }
 0x9c2   :  { %4098 = vpow2.f32 %v3323_v22 }
 0x9c3   :  { %4100 = vpow2.f32 %v3322_v23 }
 0x9c4   :  { %v4087_v16 = vpop.eup %4086 }
 0x9c5   :  { %v4089_v17 = vpop.eup %4088  ;;  %1377 = vrot.lane.b32.xlu1 %v4087_v16, %s4312_s2 }
 0x9c6   :  { %1375 = vrot.lane.b32.xlu0 %v4089_v17, %s4312_s2 }
 0x9c8   :  { %v4091_v18 = vpop.eup %4090 }
 0x9c9   :  { %v4093_v19 = vpop.eup %4092  ;;  %1381 = vrot.lane.b32.xlu1 %v4091_v18, %s4312_s2 }
 0x9ca   :  { %1379 = vrot.lane.b32.xlu0 %v4093_v19, %s4312_s2  ;;  %v4095_v24 = vpop.eup %4094 }
 0x9cb   :  { %v4097_v25 = vpop.eup %4096  ;;  %v1352_v26 = vadd.f32 1.0, %v4095_v24 }
 0x9cc   :  { %v4099_v28 = vpop.eup %4098  ;;  %v1351_v29 = vadd.f32 1.0, %v4097_v25 }
 0x9cd   :  { %v4101_v30 = vpop.eup %4100  ;;  %4102 = vrcp.f32 %v1352_v26  ;;  %v1354_v31 = vadd.f32 1.0, %v4099_v28 }
 0x9ce   :  { %4104 = vrcp.f32 %v1351_v29  ;;  %v1353_v32 = vadd.f32 1.0, %v4101_v30 }
 0x9cf   :  { %4106 = vrcp.f32 %v1354_v31 }
 0x9d0   :  { %4108 = vrcp.f32 %v1353_v32 }
 0x9d7   :  { %v4103_v33 = vpop.eup %4102 }
 0x9d8   :  { %v4105_v36 = vpop.eup %4104  ;;  %v1368_v48 = vmul.f32 %v4103_v33, %v4600_v54 }
 0x9d9   :  { %v4107_v41 = vpop.eup %4106  ;;  %v1367_v50 = vmul.f32 %v4105_v36, %v4602_v58 }
 0x9da   :  { %v4109_v43 = vpop.eup %4108  ;;  %v1370_v53 = vmul.f32 %v4107_v41, %v4608_v63 }
 0x9db   :  { %v1369_v55 = vmul.f32 %v4109_v43, %v4610_v57  ;;  %v42_v57 = vld [vmem:[%s5027_s0 + $0x98] sm:$0xff] }
 0xa37   :  { %v1378_v34 = vpop.permute.xlu1 %1377 }
 0xa38   :  { %v1388_v37 = vmul.f32 %v4103_v33, %v1378_v34  ;;  %v1376_v39 = vpop.permute.xlu0 %1375 }
 0xa39   :  { %v1387_v40 = vmul.f32 %v4105_v36, %v1376_v39 }
 0xa3a   :  { %1397 = vrot.lane.b32.xlu1 %v1388_v37, %s4313_s8 }
 0xa3b   :  { %v1382_v42 = vpop.permute.xlu1 %1381  ;;  %1395 = vrot.lane.b32.xlu0 %v1387_v40, %s4313_s8 }
 0xa3c   :  { %v1390_v44 = vmul.f32 %v4107_v41, %v1382_v42  ;;  %v1380_v46 = vpop.permute.xlu0 %1379 }
 0xa3d   :  { %v1389_v47 = vmul.f32 %v4109_v43, %v1380_v46 }
 0xa3e   :  { %1401 = vrot.lane.b32.xlu1 %v1390_v44, %s4313_s8 }
 0xa3f   :  { %1399 = vrot.lane.b32.xlu0 %v1389_v47, %s4313_s8 }
 0xaac   :  { %v1398_v49 = vpop.permute.xlu1 %1397 }
 0xaad   :  { %v4640_v56 = vadd.f32 %v1398_v49, %v1368_v48  ;;  %v1396_v60 = vpop.permute.xlu0 %1395 }
 0xaae   :  { %v4642_v51 = vadd.f32 %v1396_v60, %v1367_v50 }
 0xaaf   :  { %4110 = vtanh.f32 %v4640_v56 }
 0xab0   :  { %4112 = vtanh.f32 %v4642_v51  ;;  %v1402_v52 = vpop.permute.xlu1 %1401 }
 0xab1   :  { %v4648_v0 = vadd.f32 %v1402_v52, %v1370_v53  ;;  %v1400_v54 = vpop.permute.xlu0 %1399 }
 0xab2   :  { %v4650_v61 = vadd.f32 %v1400_v54, %v1369_v55 }
 0xab3   :  { %4114 = vtanh.f32 %v4648_v0 }
 0xab4   :  { %4116 = vtanh.f32 %v4650_v61 }
 0xab9   :  { %v4111_v58 = vpop.eup %4110 }
 0xaba   :  { %v4113_v59 = vpop.eup %4112  ;;  %1421 = vrot.lane.b32.xlu1 %v4111_v58, %s4312_s2 }
 0xabb   :  { %1419 = vrot.lane.b32.xlu0 %v4113_v59, %s4312_s2 }
 0xabd   :  { %v4115_v63 = vpop.eup %4114 }
 0xabe   :  { %v4117_v62 = vpop.eup %4116  ;;  %1425 = vrot.lane.b32.xlu1 %v4115_v63, %s4312_s2 }
 0xabf   :  { %1423 = vrot.lane.b32.xlu0 %v4117_v62, %s4312_s2 }
 0xac2   :  { %115 = vperm.xlu1 %3989, %v42_v57  }
 0xac3   :  { %112 = vperm.xlu0 %3988, %v41_v1  }
 0xb2c   :  { %v1422_v2 = vpop.permute.xlu1 %1421 }
 0xb2d   :  { %v1432_v3 = vmul.f32 %v4103_v33, %v1422_v2  ;;  %v1420_v4 = vpop.permute.xlu0 %1419 }
 0xb2e   :  { %v1431_v5 = vmul.f32 %v4105_v36, %v1420_v4 }
 0xb2f   :  { %1445 = vrot.lane.b32.xlu1 %v1432_v3, %s4313_s8 }
 0xb30   :  { %v1426_v6 = vpop.permute.xlu1 %1425  ;;  %1443 = vrot.lane.b32.xlu0 %v1431_v5, %s4313_s8 }
 0xb31   :  { %v1434_v7 = vmul.f32 %v4107_v41, %v1426_v6  ;;  %v1424_v8 = vpop.permute.xlu0 %1423 }
 0xb32   :  { %v1433_v9 = vmul.f32 %v4109_v43, %v1424_v8 }
 0xb33   :  { %1449 = vrot.lane.b32.xlu1 %v1434_v7, %s4313_s8 }
 0xb34   :  { %1447 = vrot.lane.b32.xlu0 %v1433_v9, %s4313_s8 }
 0xb41   :  { %v116_v10 = vpop.permute.xlu1 %115 }
 0xb42   :  { %vm172_vm5 = vcmp.eq.s32.totalorder %v116_v10, %v4438_v35  ;;  %v113_v11 = vpop.permute.xlu0 %112 }
 0xb43   :  { %vm171_vm6 = vcmp.eq.s32.totalorder %v113_v11, %v4438_v35  ;;  %v3251_v13 = vsel %vm172_vm5, 1.0, %v4311_v38  ;;  %v43_v11 = vld [vmem:[%s5027_s0 + $0xa0] sm:$0xff] }
 0xb44   :  { %v3250_v12 = vsel %vm171_vm6, 1.0, %v4311_v38 }
 0xb45   :  { %3571 = vmatprep.mubr.msk.f32.mxu1 %vm257_vm0, %v3250_v12  ;;  %v46_v12 = vld [vmem:[%s5027_s0 + $0xb8] sm:$0xff] }
 0xb46   :  { %3572 = vmatmul.mubr.msk.f32.vlgmr.msra.gmra.mrb[0].mxu1 %vm257_vm0, %v3251_v13  ;;  %v45_v13 = vld [vmem:[%s5027_s0 + $0xb0] sm:$0xff] }
 0xba1   :  { %v1446_v14 = vpop.permute.xlu1 %1445 }
 0xba2   :  { %v1444_v15 = vpop.permute.xlu0 %1443 }
 0xba3   :  { %3656 = vmatprep.mubr.msk.f32.mxu0 %vm619_vm4, %v1444_v15 }
 0xba4   :  { %3657 = vmatmul.mubr.msk.f32.vlgmr.msra.gmra.mrb[16].mxu0 %vm619_vm4, %v1446_v14 }
 0xba5   :  { %3865 = vmatpush3.bf16.msra.mxu0 %v4417_v27  ;;  %v1450_v17 = vpop.permute.xlu1 %1449 }
 0xba6   :  { %v1448_v16 = vpop.permute.xlu0 %1447  ;;  %3867 = vmatprep.subr.bf16.mxu0 %v4452_v45 }
 0xba7   :  { %3659 = vmatprep.mubr.msk.f32.mxu0 %vm619_vm4, %v1448_v16 }
 0xba8   :  { %3660 = vmatmul.mubr.msk.f32.gmra.mrb[18].mxu0 %vm619_vm4, %v1450_v17 }
 0xba9   :  { %3869 = vmatpush3.bf16.msra.mxu0 %v4452_v45 }
 0xbaa   :  { %3871 = vmatprep.subr.bf16.mxu0 %v4417_v27 }
 0xc19   :  { %v3573_v18 = vpop.f32.mrb[0].mxu1 }
 0xc1a   :  { %v510_v19 = vpop.f32.mrb[1].mxu1 }
 0xc77   :  { %v3658_v20 = vpop.f32.mrb[16].mxu0 }
 0xc78   :  { %4118 = vtanh.f32 %v3658_v20  ;;  %v1525_v21 = vpop.f32.mrb[17].mxu0  ;;  %v3329_v31 = vmul.f32 -1.442695, %v3658_v20 }
 0xc79   :  { %4120 = vtanh.f32 %v1525_v21  ;;  %v3328_v32 = vmul.f32 -1.442695, %v1525_v21 }
 0xc7b   :  { %v3661_v22 = vpop.f32.mrb[18].mxu0 }
 0xc7c   :  { %v1547_v23 = vadd.f32 %v3661_v22, %v3573_v18  ;;  %v1535_v24 = vpop.f32.mrb[19].mxu0 }
 0xc7d   :  { %v1546_v25 = vadd.f32 %v1535_v24, %v510_v19 }
 0xc7e   :  { %4122 = vtanh.f32 %v1547_v23  ;;  %v3331_v33 = vmul.f32 -1.442695, %v1547_v23 }
 0xc7f   :  { %4124 = vtanh.f32 %v1546_v25  ;;  %v3330_v34 = vmul.f32 -1.442695, %v1546_v25 }
 0xc80   :  { %4126 = vpow2.f32 %v3329_v31 }
 0xc81   :  { %4128 = vpow2.f32 %v3328_v32 }
 0xc82   :  { %v4119_v26 = vpop.eup %4118  ;;  %4130 = vpow2.f32 %v3331_v33 }
 0xc83   :  { %v4121_v28 = vpop.eup %4120  ;;  %1586 = vrot.lane.b32.xlu1 %v4119_v26, %s4312_s2  ;;  %4132 = vpow2.f32 %v3330_v34 }
 0xc84   :  { %1584 = vrot.lane.b32.xlu0 %v4121_v28, %s4312_s2 }
 0xc88   :  { %v4123_v29 = vpop.eup %4122 }
 0xc89   :  { %v4125_v30 = vpop.eup %4124  ;;  %1590 = vrot.lane.b32.xlu1 %v4123_v29, %s4312_s2 }
 0xc8a   :  { %1588 = vrot.lane.b32.xlu0 %v4125_v30, %s4312_s2  ;;  %v4127_v36 = vpop.eup %4126 }
 0xc8b   :  { %v4129_v37 = vpop.eup %4128  ;;  %v1561_v39 = vadd.f32 1.0, %v4127_v36 }
 0xc8c   :  { %v1560_v40 = vadd.f32 1.0, %v4129_v37  ;;  %v4131_v41 = vpop.eup %4130 }
 0xc8d   :  { %v4133_v42 = vpop.eup %4132  ;;  %4134 = vrcp.f32 %v1561_v39  ;;  %v1563_v43 = vadd.f32 1.0, %v4131_v41 }
 0xc8e   :  { %4136 = vrcp.f32 %v1560_v40  ;;  %v1562_v44 = vadd.f32 1.0, %v4133_v42 }
 0xc8f   :  { %4138 = vrcp.f32 %v1563_v43 }
 0xc90   :  { %4140 = vrcp.f32 %v1562_v44 }
 0xc97   :  { %v4135_v46 = vpop.eup %4134 }
 0xc98   :  { %v4137_v48 = vpop.eup %4136  ;;  %v1577_v63 = vmul.f32 %v4135_v46, %v4640_v56 }
 0xc99   :  { %v4139_v53 = vpop.eup %4138  ;;  %v1576_v57 = vmul.f32 %v4137_v48, %v4642_v51 }
 0xc9a   :  { %v4141_v55 = vpop.eup %4140  ;;  %v1579_v4 = vmul.f32 %v4139_v53, %v4648_v0 }
 0xc9b   :  { %v1578_v6 = vmul.f32 %v4141_v55, %v4650_v61  ;;  %v44_v61 = vld [vmem:[%s5027_s0 + $0xa8] sm:$0xff] }
 0xcf5   :  { %v1587_v47 = vpop.permute.xlu1 %1586 }
 0xcf6   :  { %v1597_v49 = vmul.f32 %v4135_v46, %v1587_v47  ;;  %v1585_v50 = vpop.permute.xlu0 %1584 }
 0xcf7   :  { %v1596_v60 = vmul.f32 %v4137_v48, %v1585_v50 }
 0xcf8   :  { %1606 = vrot.lane.b32.xlu1 %v1597_v49, %s4313_s8 }
 0xcf9   :  { %1604 = vrot.lane.b32.xlu0 %v1596_v60, %s4313_s8 }
 0xcfb   :  { %v1591_v52 = vpop.permute.xlu1 %1590 }
 0xcfc   :  { %v1599_v54 = vmul.f32 %v4139_v53, %v1591_v52  ;;  %v1589_v58 = vpop.permute.xlu0 %1588 }
 0xcfd   :  { %v1598_v59 = vmul.f32 %v4141_v55, %v1589_v58 }
 0xcfe   :  { %1610 = vrot.lane.b32.xlu1 %v1599_v54, %s4313_s8 }
 0xcff   :  { %1608 = vrot.lane.b32.xlu0 %v1598_v59, %s4313_s8 }
 0xd6a   :  { %v1607_v62 = vpop.permute.xlu1 %1606 }
 0xd6b   :  { %v4692_v1 = vadd.f32 %v1607_v62, %v1577_v63  ;;  %v1605_v2 = vpop.permute.xlu0 %1604 }
 0xd6c   :  { %v4694_v3 = vadd.f32 %v1605_v2, %v1576_v57 }
 0xd6d   :  { %4142 = vtanh.f32 %v4692_v1 }
 0xd6e   :  { %4144 = vtanh.f32 %v4694_v3 }
 0xd70   :  { %v1611_v5 = vpop.permute.xlu1 %1610 }
 0xd71   :  { %v4700_v7 = vadd.f32 %v1611_v5, %v1579_v4  ;;  %v1609_v56 = vpop.permute.xlu0 %1608 }
 0xd72   :  { %v4702_v8 = vadd.f32 %v1609_v56, %v1578_v6 }
 0xd73   :  { %4146 = vtanh.f32 %v4700_v7 }
 0xd74   :  { %4148 = vtanh.f32 %v4702_v8 }
 0xd77   :  { %v4143_v51 = vpop.eup %4142 }
 0xd78   :  { %v4145_v9 = vpop.eup %4144  ;;  %1630 = vrot.lane.b32.xlu1 %v4143_v51, %s4312_s2 }
 0xd79   :  { %1628 = vrot.lane.b32.xlu0 %v4145_v9, %s4312_s2 }
 0xd7d   :  { %v4147_v10 = vpop.eup %4146 }
 0xd7e   :  { %v4149_v0 = vpop.eup %4148  ;;  %1634 = vrot.lane.b32.xlu1 %v4147_v10, %s4312_s2 }
 0xd7f   :  { %1632 = vrot.lane.b32.xlu0 %v4149_v0, %s4312_s2 }
 0xd82   :  { %121 = vperm.xlu1 %3989, %v44_v61  }
 0xd83   :  { %118 = vperm.xlu0 %3988, %v43_v11  }
 0xd86   :  { %127 = vperm.xlu1 %3989, %v46_v12  }
 0xd87   :  { %124 = vperm.xlu0 %3988, %v45_v13  }
 0xdea   :  { %v1631_v14 = vpop.permute.xlu1 %1630 }
 0xdeb   :  { %v1641_v15 = vmul.f32 %v4135_v46, %v1631_v14  ;;  %v1629_v16 = vpop.permute.xlu0 %1628 }
 0xdec   :  { %v1640_v17 = vmul.f32 %v4137_v48, %v1629_v16 }
 0xded   :  { %1654 = vrot.lane.b32.xlu1 %v1641_v15, %s4313_s8 }
 0xdee   :  { %1652 = vrot.lane.b32.xlu0 %v1640_v17, %s4313_s8 }
 0xdf0   :  { %v1635_v18 = vpop.permute.xlu1 %1634 }
 0xdf1   :  { %v1643_v19 = vmul.f32 %v4139_v53, %v1635_v18  ;;  %v1633_v20 = vpop.permute.xlu0 %1632 }
 0xdf2   :  { %v1642_v21 = vmul.f32 %v4141_v55, %v1633_v20 }
 0xdf3   :  { %1658 = vrot.lane.b32.xlu1 %v1643_v19, %s4313_s8 }
 0xdf4   :  { %1656 = vrot.lane.b32.xlu0 %v1642_v21, %s4313_s8 }
 0xe01   :  { %v122_v22 = vpop.permute.xlu1 %121 }
 0xe02   :  { %vm174_vm7 = vcmp.eq.s32.totalorder %v122_v22, %v4438_v35  ;;  %v119_v23 = vpop.permute.xlu0 %118 }
 0xe03   :  { %vm173_vm8 = vcmp.eq.s32.totalorder %v119_v23, %v4438_v35  ;;  %v3253_v25 = vsel %vm174_vm7, 1.0, %v4311_v38 }
 0xe04   :  { %v3252_v24 = vsel %vm173_vm8, 1.0, %v4311_v38 }
 0xe05   :  { %v128_v26 = vpop.permute.xlu1 %127  ;;  %3574 = vmatprep.mubr.msk.f32.mxu1 %vm257_vm0, %v3252_v24 }
 0xe06   :  { %vm176_vm9 = vcmp.eq.s32.totalorder %v128_v26, %v4438_v35  ;;  %3575 = vmatmul.mubr.msk.f32.gmra.mrb[2].mxu1 %vm257_vm0, %v3253_v25  ;;  %v125_v28 = vpop.permute.xlu0 %124 }
 0xe07   :  { %vm175_vm10 = vcmp.eq.s32.totalorder %v125_v28, %v4438_v35  ;;  %v3255_v30 = vsel %vm176_vm9, 1.0, %v4311_v38 }
 0xe08   :  { %v3254_v29 = vsel %vm175_vm10, 1.0, %v4311_v38 }
 0xe09   :  { %3577 = vmatprep.mubr.msk.f32.mxu1 %vm257_vm0, %v3254_v29 }
 0xe0a   :  { %3578 = vmatmul.mubr.msk.f32.gmra.mrb[4].mxu1 %vm257_vm0, %v3255_v30 }
 0xe5f   :  { %v1655_v32 = vpop.permute.xlu1 %1654 }
 0xe60   :  { %v1653_v31 = vpop.permute.xlu0 %1652 }
 0xe61   :  { %3670 = vmatprep.mubr.msk.f32.mxu0 %vm619_vm4, %v1653_v31 }
 0xe62   :  { %3671 = vmatmul.mubr.msk.f32.vlgmr.msra.gmra.mrb[20].mxu0 %vm619_vm4, %v1655_v32  ;;  %v47_v32 = vld [vmem:[%s5027_s0 + $0xc0] sm:$0xff] }
 0xe63   :  { %3873 = vmatpush3.bf16.msra.mxu0 %v4417_v27 }
 0xe64   :  { %3875 = vmatprep.subr.bf16.mxu0 %v4452_v45 }
 0xe65   :  { %v1659_v34 = vpop.permute.xlu1 %1658 }
 0xe66   :  { %v1657_v33 = vpop.permute.xlu0 %1656 }
 0xe67   :  { %3673 = vmatprep.mubr.msk.f32.mxu0 %vm619_vm4, %v1657_v33  ;;  %3877 = vmatpush3.bf16.msra.mxu0 %v4452_v45  ;;  %v50_v33 = vld [vmem:[%s5027_s0 + $0xd8] sm:$0xff] }
 0xe68   :  { %3674 = vmatmul.mubr.msk.f32.gmra.mrb[22].mxu0 %vm619_vm4, %v1659_v34  ;;  %3879 = vmatprep.subr.bf16.mxu0 %v4417_v27  ;;  %v49_v34 = vld [vmem:[%s5027_s0 + $0xd0] sm:$0xff] }
 0xed9   :  { %v3576_v36 = vpop.f32.mrb[2].mxu1 }
 0xeda   :  { %v520_v37 = vpop.f32.mrb[3].mxu1 }
 0xedd   :  { %v3579_v39 = vpop.f32.mrb[4].mxu1 }
 0xede   :  { %v530_v40 = vpop.f32.mrb[5].mxu1 }
 0xf35   :  { %v3672_v41 = vpop.f32.mrb[20].mxu0 }
 0xf36   :  { %v1754_v42 = vadd.f32 %v3672_v41, %v3576_v36  ;;  %v1734_v43 = vpop.f32.mrb[21].mxu0 }
 0xf37   :  { %v1753_v44 = vadd.f32 %v1734_v43, %v520_v37 }
 0xf38   :  { %4150 = vtanh.f32 %v1754_v42  ;;  %v3337_v55 = vmul.f32 -1.442695, %v1754_v42 }
 0xf39   :  { %4152 = vtanh.f32 %v1753_v44  ;;  %v3336_v54 = vmul.f32 -1.442695, %v1753_v44 }
 0xf3b   :  { %v3675_v46 = vpop.f32.mrb[22].mxu0 }
 0xf3c   :  { %v1756_v47 = vadd.f32 %v3675_v46, %v3579_v39  ;;  %v1744_v48 = vpop.f32.mrb[23].mxu0 }
 0xf3d   :  { %v1755_v49 = vadd.f32 %v1744_v48, %v530_v40 }
 0xf3e   :  { %4154 = vtanh.f32 %v1756_v47  ;;  %v3339_v58 = vmul.f32 -1.442695, %v1756_v47 }
 0xf3f   :  { %4156 = vtanh.f32 %v1755_v49  ;;  %v3338_v59 = vmul.f32 -1.442695, %v1755_v49 }
 0xf40   :  { %4158 = vpow2.f32 %v3337_v55 }
 0xf41   :  { %4160 = vpow2.f32 %v3336_v54 }
 0xf42   :  { %v4151_v50 = vpop.eup %4150  ;;  %4162 = vpow2.f32 %v3339_v58 }
 0xf43   :  { %v4153_v60 = vpop.eup %4152  ;;  %1795 = vrot.lane.b32.xlu1 %v4151_v50, %s4312_s2  ;;  %4164 = vpow2.f32 %v3338_v59 }
 0xf44   :  { %1793 = vrot.lane.b32.xlu0 %v4153_v60, %s4312_s2 }
 0xf48   :  { %v4155_v53 = vpop.eup %4154 }
 0xf49   :  { %v4157_v52 = vpop.eup %4156  ;;  %1799 = vrot.lane.b32.xlu1 %v4155_v53, %s4312_s2 }
 0xf4a   :  { %1797 = vrot.lane.b32.xlu0 %v4157_v52, %s4312_s2  ;;  %v4159_v63 = vpop.eup %4158 }
 0xf4b   :  { %v4161_v62 = vpop.eup %4160  ;;  %v1770_v57 = vadd.f32 1.0, %v4159_v63 }
 0xf4c   :  { %v1769_v2 = vadd.f32 1.0, %v4161_v62  ;;  %v4163_v4 = vpop.eup %4162 }
 0xf4d   :  { %v4165_v5 = vpop.eup %4164  ;;  %4166 = vrcp.f32 %v1770_v57  ;;  %v1772_v6 = vadd.f32 1.0, %v4163_v4 }
 0xf4e   :  { %4168 = vrcp.f32 %v1769_v2  ;;  %v1771_v56 = vadd.f32 1.0, %v4165_v5 }
 0xf4f   :  { %4170 = vrcp.f32 %v1772_v6 }
 0xf50   :  { %4172 = vrcp.f32 %v1771_v56 }
 0xf57   :  { %v4167_v51 = vpop.eup %4166 }
 0xf58   :  { %v4169_v10 = vpop.eup %4168  ;;  %v1786_v18 = vmul.f32 %v4167_v51, %v4692_v1 }
 0xf59   :  { %v4171_v12 = vpop.eup %4170  ;;  %v1785_v20 = vmul.f32 %v4169_v10, %v4694_v3 }
 0xf5a   :  { %v4173_v14 = vpop.eup %4172  ;;  %v1788_v24 = vmul.f32 %v4171_v12, %v4700_v7 }
 0xf5b   :  { %v1787_v26 = vmul.f32 %v4173_v14, %v4702_v8  ;;  %v48_v8 = vld [vmem:[%s5027_s0 + $0xc8] sm:$0xff] }
 0xfb5   :  { %v1796_v9 = vpop.permute.xlu1 %1795 }
 0xfb6   :  { %v1806_v0 = vmul.f32 %v4167_v51, %v1796_v9  ;;  %v1794_v61 = vpop.permute.xlu0 %1793 }
 0xfb7   :  { %v1805_v11 = vmul.f32 %v4169_v10, %v1794_v61 }
 0xfb8   :  { %1815 = vrot.lane.b32.xlu1 %v1806_v0, %s4313_s8 }
 0xfb9   :  { %1813 = vrot.lane.b32.xlu0 %v1805_v11, %s4313_s8 }
 0xfbb   :  { %v1800_v13 = vpop.permute.xlu1 %1799 }
 0xfbc   :  { %v1808_v15 = vmul.f32 %v4171_v12, %v1800_v13  ;;  %v1798_v16 = vpop.permute.xlu0 %1797 }
 0xfbd   :  { %v1807_v17 = vmul.f32 %v4173_v14, %v1798_v16 }
 0xfbe   :  { %1819 = vrot.lane.b32.xlu1 %v1808_v15, %s4313_s8 }
 0xfbf   :  { %1817 = vrot.lane.b32.xlu0 %v1807_v17, %s4313_s8 }
0x102a   :  { %v1816_v19 = vpop.permute.xlu1 %1815 }
0x102b   :  { %v4756_v21 = vadd.f32 %v1816_v19, %v1786_v18  ;;  %v1814_v22 = vpop.permute.xlu0 %1813 }
0x102c   :  { %v4758_v23 = vadd.f32 %v1814_v22, %v1785_v20 }
0x102d   :  { %4174 = vtanh.f32 %v4756_v21 }
0x102e   :  { %4176 = vtanh.f32 %v4758_v23 }
0x1030   :  { %v1820_v25 = vpop.permute.xlu1 %1819 }
0x1031   :  { %v4764_v28 = vadd.f32 %v1820_v25, %v1788_v24  ;;  %v1818_v1 = vpop.permute.xlu0 %1817 }
0x1032   :  { %v4766_v29 = vadd.f32 %v1818_v1, %v1787_v26 }
0x1033   :  { %4178 = vtanh.f32 %v4764_v28 }
0x1034   :  { %4180 = vtanh.f32 %v4766_v29 }
0x1037   :  { %v4175_v3 = vpop.eup %4174 }
0x1038   :  { %v4177_v30 = vpop.eup %4176  ;;  %1839 = vrot.lane.b32.xlu1 %v4175_v3, %s4312_s2 }
0x1039   :  { %1837 = vrot.lane.b32.xlu0 %v4177_v30, %s4312_s2 }
0x103d   :  { %v4179_v31 = vpop.eup %4178 }
0x103e   :  { %v4181_v7 = vpop.eup %4180  ;;  %1843 = vrot.lane.b32.xlu1 %v4179_v31, %s4312_s2 }
0x103f   :  { %1841 = vrot.lane.b32.xlu0 %v4181_v7, %s4312_s2 }
0x1042   :  { %133 = vperm.xlu1 %3989, %v48_v8  }
0x1043   :  { %130 = vperm.xlu0 %3988, %v47_v32  }
0x1046   :  { %139 = vperm.xlu1 %3989, %v50_v33  }
0x1047   :  { %136 = vperm.xlu0 %3988, %v49_v34  }
0x10aa   :  { %v1840_v36 = vpop.permute.xlu1 %1839 }
0x10ab   :  { %v1850_v37 = vmul.f32 %v4167_v51, %v1840_v36  ;;  %v1838_v39 = vpop.permute.xlu0 %1837 }
0x10ac   :  { %v1849_v40 = vmul.f32 %v4169_v10, %v1838_v39 }
0x10ad   :  { %1863 = vrot.lane.b32.xlu1 %v1850_v37, %s4313_s8 }
0x10ae   :  { %1861 = vrot.lane.b32.xlu0 %v1849_v40, %s4313_s8 }
0x10b0   :  { %v1844_v41 = vpop.permute.xlu1 %1843 }
0x10b1   :  { %v1852_v42 = vmul.f32 %v4171_v12, %v1844_v41  ;;  %v1842_v43 = vpop.permute.xlu0 %1841 }
0x10b2   :  { %v1851_v44 = vmul.f32 %v4173_v14, %v1842_v43 }
0x10b3   :  { %1867 = vrot.lane.b32.xlu1 %v1852_v42, %s4313_s8 }
0x10b4   :  { %1865 = vrot.lane.b32.xlu0 %v1851_v44, %s4313_s8 }
0x10c1   :  { %v134_v46 = vpop.permute.xlu1 %133 }
0x10c2   :  { %vm178_vm11 = vcmp.eq.s32.totalorder %v134_v46, %v4438_v35  ;;  %v131_v47 = vpop.permute.xlu0 %130 }
0x10c3   :  { %vm177_vm12 = vcmp.eq.s32.totalorder %v131_v47, %v4438_v35  ;;  %v3257_v49 = vsel %vm178_vm11, 1.0, %v4311_v38 }
0x10c4   :  { %v3256_v48 = vsel %vm177_vm12, 1.0, %v4311_v38 }
0x10c5   :  { %v140_v50 = vpop.permute.xlu1 %139  ;;  %3580 = vmatprep.mubr.msk.f32.mxu1 %vm257_vm0, %v3256_v48 }
0x10c6   :  { %vm180_vm13 = vcmp.eq.s32.totalorder %v140_v50, %v4438_v35  ;;  %3581 = vmatmul.mubr.msk.f32.gmra.mrb[6].mxu1 %vm257_vm0, %v3257_v49  ;;  %v137_v60 = vpop.permute.xlu0 %136 }
0x10c7   :  { %vm179_vm14 = vcmp.eq.s32.totalorder %v137_v60, %v4438_v35  ;;  %v3259_v52 = vsel %vm180_vm13, 1.0, %v4311_v38 }
0x10c8   :  { %v3258_v53 = vsel %vm179_vm14, 1.0, %v4311_v38 }
0x10c9   :  { %3583 = vmatprep.mubr.msk.f32.mxu1 %vm257_vm0, %v3258_v53 }
0x10ca   :  { %3584 = vmatmul.mubr.msk.f32.gmra.mrb[8].mxu1 %vm257_vm0, %v3259_v52  ;;  %v51_v52 = vld [vmem:[%s5027_s0 + $0xe0] sm:$0xff] }
0x111f   :  { %v1864_v54 = vpop.permute.xlu1 %1863 }
0x1120   :  { %v1862_v55 = vpop.permute.xlu0 %1861 }
0x1121   :  { %3684 = vmatprep.mubr.msk.f32.mxu0 %vm619_vm4, %v1862_v55  ;;  %v54_v55 = vld [vmem:[%s5027_s0 + $0xf8] sm:$0xff] }
0x1122   :  { %3685 = vmatmul.mubr.msk.f32.vlgmr.msra.gmra.mrb[24].mxu0 %vm619_vm4, %v1864_v54  ;;  %v53_v54 = vld [vmem:[%s5027_s0 + $0xf0] sm:$0xff] }
0x1123   :  { %3881 = vmatpush3.bf16.msra.mxu0 %v4417_v27 }
0x1124   :  { %3883 = vmatprep.subr.bf16.mxu0 %v4452_v45 }
0x1125   :  { %v1868_v59 = vpop.permute.xlu1 %1867 }
0x1126   :  { %v1866_v58 = vpop.permute.xlu0 %1865 }
0x1127   :  { %3687 = vmatprep.mubr.msk.f32.mxu0 %vm619_vm4, %v1866_v58  ;;  %3885 = vmatpush3.bf16.msra.mxu0 %v4452_v45 }
0x1128   :  { %3688 = vmatmul.mubr.msk.f32.gmra.mrb[26].mxu0 %vm619_vm4, %v1868_v59 }
0x1199   :  { %v3582_v63 = vpop.f32.mrb[6].mxu1 }
0x119a   :  { %v540_v62 = vpop.f32.mrb[7].mxu1 }
0x119d   :  { %v3585_v57 = vpop.f32.mrb[8].mxu1 }
0x119e   :  { %v550_v2 = vpop.f32.mrb[9].mxu1 }
0x11f5   :  { %v3686_v4 = vpop.f32.mrb[24].mxu0 }
0x11f6   :  { %v1963_v5 = vadd.f32 %v3686_v4, %v3582_v63  ;;  %v1943_v6 = vpop.f32.mrb[25].mxu0 }
0x11f7   :  { %v1962_v56 = vadd.f32 %v1943_v6, %v540_v62 }
0x11f8   :  { %4182 = vtanh.f32 %v1963_v5  ;;  %v3345_v12 = vmul.f32 -1.442695, %v1963_v5 }
0x11f9   :  { %4184 = vtanh.f32 %v1962_v56  ;;  %v3344_v13 = vmul.f32 -1.442695, %v1962_v56 }
0x11fb   :  { %v3689_v27 = vpop.f32.mrb[26].mxu0 }
0x11fc   :  { %v1965_v51 = vadd.f32 %v3689_v27, %v3585_v57  ;;  %v1953_v9 = vpop.f32.mrb[27].mxu0 }
0x11fd   :  { %v1964_v10 = vadd.f32 %v1953_v9, %v550_v2 }
0x11fe   :  { %4186 = vtanh.f32 %v1965_v51  ;;  %v3347_v14 = vmul.f32 -1.442695, %v1965_v51 }
0x11ff   :  { %4188 = vtanh.f32 %v1964_v10  ;;  %v3346_v15 = vmul.f32 -1.442695, %v1964_v10 }
0x1200   :  { %4190 = vpow2.f32 %v3345_v12 }
0x1201   :  { %4192 = vpow2.f32 %v3344_v13 }
0x1202   :  { %v4183_v0 = vpop.eup %4182  ;;  %4194 = vpow2.f32 %v3347_v14 }
0x1203   :  { %v4185_v45 = vpop.eup %4184  ;;  %2004 = vrot.lane.b32.xlu1 %v4183_v0, %s4312_s2  ;;  %4196 = vpow2.f32 %v3346_v15 }
0x1204   :  { %2002 = vrot.lane.b32.xlu0 %v4185_v45, %s4312_s2 }
0x1208   :  { %v4187_v61 = vpop.eup %4186 }
0x1209   :  { %v4189_v11 = vpop.eup %4188  ;;  %2008 = vrot.lane.b32.xlu1 %v4187_v61, %s4312_s2 }
0x120a   :  { %2006 = vrot.lane.b32.xlu0 %v4189_v11, %s4312_s2  ;;  %v4191_v16 = vpop.eup %4190 }
0x120b   :  { %v4193_v17 = vpop.eup %4192  ;;  %v1979_v18 = vadd.f32 1.0, %v4191_v16 }
0x120c   :  { %v1978_v19 = vadd.f32 1.0, %v4193_v17  ;;  %v4195_v20 = vpop.eup %4194 }
0x120d   :  { %v4197_v22 = vpop.eup %4196  ;;  %4198 = vrcp.f32 %v1979_v18  ;;  %v1981_v24 = vadd.f32 1.0, %v4195_v20 }
0x120e   :  { %4200 = vrcp.f32 %v1978_v19  ;;  %v1980_v25 = vadd.f32 1.0, %v4197_v22 }
0x120f   :  { %4202 = vrcp.f32 %v1981_v24 }
0x1210   :  { %4204 = vrcp.f32 %v1980_v25 }
0x1217   :  { %v4199_v26 = vpop.eup %4198 }
0x1218   :  { %v4201_v3 = vpop.eup %4200  ;;  %v1995_v39 = vmul.f32 %v4199_v26, %v4756_v21 }
0x1219   :  { %v4203_v8 = vpop.eup %4202  ;;  %v1994_v41 = vmul.f32 %v4201_v3, %v4758_v23 }
0x121a   :  { %v4205_v33 = vpop.eup %4204  ;;  %v1997_v46 = vmul.f32 %v4203_v8, %v4764_v28 }
0x121b   :  { %v1996_v48 = vmul.f32 %v4205_v33, %v4766_v29  ;;  %v52_v29 = vld [vmem:[%s5027_s0 + $0xe8] sm:$0xff] }
0x1275   :  { %v2005_v1 = vpop.permute.xlu1 %2004 }
0x1276   :  { %v2015_v30 = vmul.f32 %v4199_v26, %v2005_v1  ;;  %v2003_v31 = vpop.permute.xlu0 %2002 }
0x1277   :  { %v2014_v7 = vmul.f32 %v4201_v3, %v2003_v31 }
0x1278   :  { %2024 = vrot.lane.b32.xlu1 %v2015_v30, %s4313_s8 }
0x1279   :  { %2022 = vrot.lane.b32.xlu0 %v2014_v7, %s4313_s8 }
0x127b   :  { %v2009_v32 = vpop.permute.xlu1 %2008 }
0x127c   :  { %v2017_v34 = vmul.f32 %v4203_v8, %v2009_v32  ;;  %v2007_v36 = vpop.permute.xlu0 %2006 }
0x127d   :  { %v2016_v37 = vmul.f32 %v4205_v33, %v2007_v36 }
0x127e   :  { %2028 = vrot.lane.b32.xlu1 %v2017_v34, %s4313_s8 }
0x127f   :  { %2026 = vrot.lane.b32.xlu0 %v2016_v37, %s4313_s8 }
0x12ea   :  { %v2025_v40 = vpop.permute.xlu1 %2024 }
0x12eb   :  { %v4819_v42 = vadd.f32 %v2025_v40, %v1995_v39  ;;  %v2023_v43 = vpop.permute.xlu0 %2022 }
0x12ec   :  { %v4821_v44 = vadd.f32 %v2023_v43, %v1994_v41 }
0x12ed   :  { %4206 = vtanh.f32 %v4819_v42 }
0x12ee   :  { %4208 = vtanh.f32 %v4821_v44 }
0x12f0   :  { %v2029_v47 = vpop.permute.xlu1 %2028 }
0x12f1   :  { %v4827_v49 = vadd.f32 %v2029_v47, %v1997_v46  ;;  %v2027_v21 = vpop.permute.xlu0 %2026 }
0x12f2   :  { %v4829_v50 = vadd.f32 %v2027_v21, %v1996_v48 }
0x12f3   :  { %4210 = vtanh.f32 %v4827_v49 }
0x12f4   :  { %4212 = vtanh.f32 %v4829_v50 }
0x12f7   :  { %v4207_v23 = vpop.eup %4206 }
0x12f8   :  { %v4209_v60 = vpop.eup %4208  ;;  %2048 = vrot.lane.b32.xlu1 %v4207_v23, %s4312_s2 }
0x12f9   :  { %2046 = vrot.lane.b32.xlu0 %v4209_v60, %s4312_s2 }
0x12fd   :  { %v4211_v53 = vpop.eup %4210 }
0x12fe   :  { %v4213_v28 = vpop.eup %4212  ;;  %2052 = vrot.lane.b32.xlu1 %v4211_v53, %s4312_s2 }
0x12ff   :  { %2050 = vrot.lane.b32.xlu0 %v4213_v28, %s4312_s2 }
0x1302   :  { %145 = vperm.xlu1 %3989, %v52_v29  }
0x1303   :  { %142 = vperm.xlu0 %3988, %v51_v52  }
0x1306   :  { %151 = vperm.xlu1 %3989, %v54_v55  }
0x1307   :  { %148 = vperm.xlu0 %3988, %v53_v54  }
0x136a   :  { %v2049_v58 = vpop.permute.xlu1 %2048 }
0x136b   :  { %v2059_v59 = vmul.f32 %v4199_v26, %v2049_v58  ;;  %v2047_v63 = vpop.permute.xlu0 %2046 }
0x136c   :  { %v2058_v62 = vmul.f32 %v4201_v3, %v2047_v63 }
0x136d   :  { %2072 = vrot.lane.b32.xlu1 %v2059_v59, %s4313_s8 }
0x136e   :  { %2070 = vrot.lane.b32.xlu0 %v2058_v62, %s4313_s8 }
0x1370   :  { %v2053_v57 = vpop.permute.xlu1 %2052 }
0x1371   :  { %v2061_v2 = vmul.f32 %v4203_v8, %v2053_v57  ;;  %v2051_v4 = vpop.permute.xlu0 %2050 }
0x1372   :  { %v2060_v5 = vmul.f32 %v4205_v33, %v2051_v4 }
0x1373   :  { %2076 = vrot.lane.b32.xlu1 %v2061_v2, %s4313_s8 }
0x1374   :  { %2074 = vrot.lane.b32.xlu0 %v2060_v5, %s4313_s8 }
0x1381   :  { %v146_v6 = vpop.permute.xlu1 %145 }
0x1382   :  { %vm182_vm15 = vcmp.eq.s32.totalorder %v146_v6, %v4438_v35  ;;  %v143_v56 = vpop.permute.xlu0 %142 }
0x1383   :  { %vm181_vm1 = vcmp.eq.s32.totalorder %v143_v56, %v4438_v35  ;;  %v3261_v51 = vsel %vm182_vm15, 1.0, %v4311_v38 }
0x1384   :  { %v3260_v27 = vsel %vm181_vm1, 1.0, %v4311_v38 }
0x1385   :  { %v152_v9 = vpop.permute.xlu1 %151  ;;  %3586 = vmatprep.mubr.msk.f32.mxu1 %vm257_vm0, %v3260_v27 }
0x1386   :  { %vm184_vm2 = vcmp.eq.s32.totalorder %v152_v9, %v4438_v35  ;;  %3587 = vmatmul.mubr.msk.f32.gmra.mrb[10].mxu1 %vm257_vm0, %v3261_v51  ;;  %v149_v10 = vpop.permute.xlu0 %148 }
0x1387   :  { %vm183_vm3 = vcmp.eq.s32.totalorder %v149_v10, %v4438_v35  ;;  %v3263_v45 = vsel %vm184_vm2, 1.0, %v4311_v38 }
0x1388   :  { %v3262_v0 = vsel %vm183_vm3, 1.0, %v4311_v38 }
0x1389   :  { %3589 = vmatprep.mubr.msk.f32.mxu1 %vm257_vm0, %v3262_v0 }
0x138a   :  { %3590 = vmatmul.mubr.msk.f32.gmra.mrb[12].mxu1 %vm257_vm0, %v3263_v45  ;;  %vm4315_vm0 = vmmov 0  }
0x13df   :  { %v2073_v11 = vpop.permute.xlu1 %2072 }
0x13e0   :  { %v2071_v61 = vpop.permute.xlu0 %2070 }
0x13e1   :  { %3698 = vmatprep.mubr.msk.f32.mxu0 %vm619_vm4, %v2071_v61 }
0x13e2   :  { %3699 = vmatmul.mubr.msk.f32.vlgmr.msra.gmra.mrb[28].mxu0 %vm619_vm4, %v2073_v11 }
0x13e5   :  { %v2077_v13 = vpop.permute.xlu1 %2076 }
0x13e6   :  { %v2075_v12 = vpop.permute.xlu0 %2074 }
0x13e7   :  { %3701 = vmatprep.mubr.msk.f32.mxu0 %vm619_vm4, %v2075_v12 }
0x13e8   :  { %3702 = vmatmul.mubr.msk.f32.gmra.mrb[30].mxu0 %vm619_vm4, %v2077_v13  ;;  %v4314_v13 = vmov 0.0|0.0  }
0x1459   :  { %v3588_v35 = vpop.f32.mrb[10].mxu1 }
0x145a   :  { %v560_v14 = vpop.f32.mrb[11].mxu1 }
0x145d   :  { %v3591_v15 = vpop.f32.mrb[12].mxu1 }
0x145e   :  { %v570_v16 = vpop.f32.mrb[13].mxu1 }
0x14b5   :  { %v3700_v17 = vpop.f32.mrb[28].mxu0 }
0x14b6   :  { %v2172_v18 = vadd.f32 %v3700_v17, %v3588_v35  ;;  %v2152_v19 = vpop.f32.mrb[29].mxu0 }
0x14b7   :  { %v2171_v20 = vadd.f32 %v2152_v19, %v560_v14 }
0x14b8   :  { %4214 = vtanh.f32 %v2172_v18  ;;  %v3353_v7 = vmul.f32 -1.442695, %v2172_v18 }
0x14b9   :  { %4216 = vtanh.f32 %v2171_v20  ;;  %v3352_v8 = vmul.f32 -1.442695, %v2171_v20 }
0x14bb   :  { %v3703_v22 = vpop.f32.mrb[30].mxu0 }
0x14bc   :  { %v2174_v24 = vadd.f32 %v3703_v22, %v3591_v15  ;;  %v2162_v25 = vpop.f32.mrb[31].mxu0  ;;  %v2387_v22 = vld [vmem:[%s5031_s4] sm:$0xff] }
0x14bd   :  { %v2173_v26 = vadd.f32 %v2162_v25, %v570_v16 }
0x14be   :  { %4218 = vtanh.f32 %v2174_v24  ;;  %v3355_v32 = vmul.f32 -1.442695, %v2174_v24  ;;  %v2388_v24 = vld [vmem:[%s5031_s4 + $0x8] sm:$0xff] }
0x14bf   :  { %4220 = vtanh.f32 %v2173_v26  ;;  %v3354_v33 = vmul.f32 -1.442695, %v2173_v26  ;;  %v4908_v25 = vpack.c.bf16 %v2388_v24, %v2387_v22 }
0x14c0   :  { %4222 = vpow2.f32 %v3353_v7 }
0x14c1   :  { %4224 = vpow2.f32 %v3352_v8 }
0x14c2   :  { %v4215_v1 = vpop.eup %4214  ;;  %4226 = vpow2.f32 %v3355_v32  ;;  %v3356_v32 = vld [vmem:[%s5032_s5] ss:$0 sm:$0xff] }
0x14c3   :  { %v4217_v3 = vpop.eup %4216  ;;  %2213 = vrot.lane.b32.xlu1 %v4215_v1, %s4312_s2  ;;  %4228 = vpow2.f32 %v3354_v33  ;;  %v2389_v1 = vld [vmem:[%s5031_s4 + $0x10] sm:$0xff] }
0x14c4   :  { %2211 = vrot.lane.b32.xlu0 %v4217_v3, %s4312_s2  ;;  %v2390_v3 = vld [vmem:[%s5031_s4 + $0x18] sm:$0xff] }
0x14c8   :  { %v4219_v30 = vpop.eup %4218 }
0x14c9   :  { %v4221_v31 = vpop.eup %4220  ;;  %2217 = vrot.lane.b32.xlu1 %v4219_v30, %s4312_s2 }
0x14ca   :  { %2215 = vrot.lane.b32.xlu0 %v4221_v31, %s4312_s2  ;;  %v4223_v34 = vpop.eup %4222  ;;  %v4919_v31 = vpack.c.bf16 %v2390_v3, %v2389_v1 }
0x14cb   :  { %v4225_v36 = vpop.eup %4224  ;;  %v2188_v37 = vadd.f32 1.0, %v4223_v34 }
0x14cc   :  { %v2187_v39 = vadd.f32 1.0, %v4225_v36  ;;  %v4227_v40 = vpop.eup %4226 }
0x14cd   :  { %v4229_v41 = vpop.eup %4228  ;;  %4230 = vrcp.f32 %v2188_v37  ;;  %v2190_v43 = vadd.f32 1.0, %v4227_v40 }
0x14ce   :  { %4232 = vrcp.f32 %v2187_v39  ;;  %v2189_v46 = vadd.f32 1.0, %v4229_v41 }
0x14cf   :  { %4234 = vrcp.f32 %v2190_v43 }
0x14d0   :  { %4236 = vrcp.f32 %v2189_v46 }
0x14d7   :  { %v4231_v47 = vpop.eup %4230 }
0x14d8   :  { %v4233_v21 = vpop.eup %4232  ;;  %v2204_v59 = vmul.f32 %v4231_v47, %v4819_v42  ;;  %v2271_v42 = vld [vmem:[%s5030_s3] sm:$0xff] }
0x14d9   :  { %v4235_v28 = vpop.eup %4234  ;;  %v2203_v62 = vmul.f32 %v4233_v21, %v4821_v44  ;;  %v2272_v44 = vld [vmem:[%s5030_s3 + $0x8] sm:$0xff] }
0x14da   :  { %v4237_v52 = vpop.eup %4236  ;;  %v2206_v5 = vmul.f32 %v4235_v28, %v4827_v49  ;;  %v2273_v49 = vld [vmem:[%s5030_s3 + $0x10] sm:$0xff]  ;;  %v3886_v10 = vpack.c.bf16 %v2272_v44, %v2271_v42 }
0x14db   :  { %v2205_v56 = vmul.f32 %v4237_v52, %v4829_v50  ;;  %v2274_v50 = vld [vmem:[%s5030_s3 + $0x18] sm:$0xff] }
0x14dc   :  { %v3890_v45 = vpack.c.bf16 %v2274_v50, %v2273_v49  ;;  %3887 = vmatprep.subr.bf16.mxu1 %v3886_v10 }
0x14dd   :  { %3889 = vmatpush3.bf16.msra.mxu1 %v3886_v10 }
0x14de   :  { %3891 = vmatprep.subr.bf16.mxu1 %v3890_v45 }
0x14e1   :  { %3893 = vmatpush3.bf16.msra.mxu1 %v3890_v45 }
0x14e2   :  { %3894 = vmatprep.subr.bf16.mxu1 %v4314_v13 }
0x1535   :  { %v2214_v48 = vpop.permute.xlu1 %2213 }
0x1536   :  { %v2224_v23 = vmul.f32 %v4231_v47, %v2214_v48  ;;  %v2212_v60 = vpop.permute.xlu0 %2211 }
0x1537   :  { %v2223_v53 = vmul.f32 %v4233_v21, %v2212_v60 }
0x1538   :  { %2233 = vrot.lane.b32.xlu1 %v2224_v23, %s4313_s8 }
0x1539   :  { %2231 = vrot.lane.b32.xlu0 %v2223_v53, %s4313_s8 }
0x153b   :  { %v2218_v29 = vpop.permute.xlu1 %2217 }
0x153c   :  { %v2226_v55 = vmul.f32 %v4235_v28, %v2218_v29  ;;  %v2216_v54 = vpop.permute.xlu0 %2215 }
0x153d   :  { %v2225_v58 = vmul.f32 %v4237_v52, %v2216_v54 }
0x153e   :  { %2237 = vrot.lane.b32.xlu1 %v2226_v55, %s4313_s8 }
0x153f   :  { %2235 = vrot.lane.b32.xlu0 %v2225_v58, %s4313_s8 }
0x15aa   :  { %v2234_v63 = vpop.permute.xlu1 %2233 }
0x15ab   :  { %v2244_v57 = vadd.f32 %v2234_v63, %v2204_v59  ;;  %v2232_v2 = vpop.permute.xlu0 %2231 }
0x15ac   :  { %v2243_v4 = vadd.f32 %v2232_v2, %v2203_v62 }
0x15ad   :  { %4238 = vtanh.f32 %v2244_v57 }
0x15ae   :  { %4240 = vtanh.f32 %v2243_v4 }
0x15b0   :  { %v2238_v6 = vpop.permute.xlu1 %2237 }
0x15b1   :  { %v2246_v27 = vadd.f32 %v2238_v6, %v2206_v5  ;;  %v2236_v51 = vpop.permute.xlu0 %2235 }
0x15b2   :  { %v2245_v9 = vadd.f32 %v2236_v51, %v2205_v56 }
0x15b3   :  { %4242 = vtanh.f32 %v2246_v27 }
0x15b4   :  { %4244 = vtanh.f32 %v2245_v9 }
0x15b7   :  { %v4239_v0 = vpop.eup %4238 }
0x15b8   :  { %v4241_v61 = vpop.eup %4240  ;;  %2257 = vrot.lane.b32.xlu1 %v4239_v0, %s4312_s2 }
0x15b9   :  { %2255 = vrot.lane.b32.xlu0 %v4241_v61, %s4312_s2 }
0x15bd   :  { %v4243_v11 = vpop.eup %4242 }
0x15be   :  { %v4245_v12 = vpop.eup %4244  ;;  %2261 = vrot.lane.b32.xlu1 %v4243_v11, %s4312_s2 }
0x15bf   :  { %2259 = vrot.lane.b32.xlu0 %v4245_v12, %s4312_s2 }
0x162a   :  { %v2258_v35 = vpop.permute.xlu1 %2257 }
0x162b   :  { %v2268_v14 = vmul.f32 %v4231_v47, %v2258_v35  ;;  %v2256_v15 = vpop.permute.xlu0 %2255 }
0x162c   :  { %v2267_v16 = vmul.f32 %v4233_v21, %v2256_v15 }
0x162d   :  { %2288 = vrot.lane.b32.xlu1 %v2268_v14, %s4313_s8 }
0x162e   :  { %2286 = vrot.lane.b32.xlu0 %v2267_v16, %s4313_s8 }
0x1630   :  { %v2262_v17 = vpop.permute.xlu1 %2261 }
0x1631   :  { %v2270_v18 = vmul.f32 %v4235_v28, %v2262_v17  ;;  %v2260_v19 = vpop.permute.xlu0 %2259 }
0x1632   :  { %v2269_v20 = vmul.f32 %v4237_v52, %v2260_v19 }
0x1633   :  { %2292 = vrot.lane.b32.xlu1 %v2270_v18, %s4313_s8 }
0x1634   :  { %2290 = vrot.lane.b32.xlu0 %v2269_v20, %s4313_s8 }
0x169f   :  { %v2289_v30 = vpop.permute.xlu1 %2288 }
0x16a0   :  { %v2287_v26 = vpop.permute.xlu0 %2286 }
0x16a1   :  { %3712 = vmatprep.mubr.msk.f32.mxu1 %vm619_vm4, %v2287_v26 }
0x16a2   :  { %3713 = vmatmul.mubr.msk.f32.vlgmr.msra.gmra.mrb[14].mxu1 %vm619_vm4, %v2289_v30 }
0x16a3   :  { %3896 = vmatpush3.bf16.msra.mxu1 %v4908_v25 }
0x16a4   :  { %3897 = vmatprep.subr.bf16.mxu1 %v4314_v13 }
0x16a5   :  { %v2293_v8 = vpop.permute.xlu1 %2292 }
0x16a6   :  { %v2291_v7 = vpop.permute.xlu0 %2290 }
0x16a7   :  { %3715 = vmatprep.mubr.msk.f32.mxu1 %vm619_vm4, %v2291_v7  ;;  %3899 = vmatpush3.bf16.msra.mxu1 %v4919_v31 }
0x16a8   :  { %3716 = vmatmul.mubr.msk.f32.gmra.mrb[16].mxu1 %vm619_vm4, %v2293_v8  ;;  %3900 = vmatprep.subr.bf16.mxu1 %v4314_v13 }
0x16a9   :  { %3726 = vmatprep.mubr.msk.f32.mxu1 %vm4315_vm0, %v4311_v38 }
0x16ac   :  { %3727 = vmatmul.mubr.f32.vlgmr.msra.gmra.mrb[18].mxu1 %v4311_v38 }
0x16ad   :  { %3902 = vmatpush3.bf16.msra.mxu1 %v4908_v25  ;;  %3737 = vmatprep.mubr.msk.f32.mxu1 %vm4315_vm0, %v4311_v38 }
0x16ae   :  { %3903 = vmatprep.subr.bf16.mxu1 %v4314_v13 }
0x16b1   :  { %3905 = vmatpush3.bf16.msra.mxu1 %v4919_v31 }
0x16b2   :  { %3906 = vmatprep.subr.bf16.mxu1 %v4314_v13 }
0x1775   :  { %v3714_v33 = vpop.f32.mrb[14].mxu1 }
0x1776   :  { %v4938_v34 = vadd.f32 %v3714_v33, %v3356_v32  ;;  %v2368_v36 = vpop.f32.mrb[15].mxu1 }
0x1777   :  { %v2369_v43 = vadd.f32 %v3356_v32, %v2368_v36 }
0x177b   :  { %v3717_v37 = vpop.f32.mrb[16].mxu1 }
0x177c   :  { %v4940_v39 = vadd.f32 %v3717_v37, %v3356_v32  ;;  %v2378_v40 = vpop.f32.mrb[17].mxu1 }
0x177d   :  { %v4942_v41 = vadd.f32 %v3356_v32, %v2378_v40 }
0x177f   :  { %v2457_v46 = vpop.f32.mrb[18].mxu1 }
0x1780   :  { %v2461_v47 = vadd.f32 %v2457_v46, %v2369_v43  ;;  %v3728_v48 = vpop.f32.mrb[19].mxu1 }
0x1782   :  { %4246 = vtanh.f32 %v2461_v47  ;;  %v3361_v23 = vmul.f32 -1.442695, %v2461_v47 }
0x1784   :  { %4248 = vpow2.f32 %v3361_v23 }
0x178c   :  { %v4247_v21 = vpop.eup %4246 }
0x178d   :  { %2471 = vrot.lane.b32.xlu0 %v4247_v21, %s4312_s2 }
0x178e   :  { %v4249_v60 = vpop.eup %4248 }
0x178f   :  { %v2465_v53 = vadd.f32 1.0, %v4249_v60 }
0x1791   :  { %4250 = vrcp.f32 %v2465_v53 }
0x179b   :  { %v4251_v28 = vpop.eup %4250 }
0x179c   :  { %v2469_v55 = vmul.f32 0.0, %v4251_v28 }
0x17ff   :  { %v2472_v29 = vpop.permute.xlu0 %2471 }
0x1800   :  { %v2474_v52 = vmul.f32 %v4251_v28, %v2472_v29 }
0x1802   :  { %2476 = vrot.lane.b32.xlu1 %v2474_v52, %s4313_s8 }
0x1874   :  { %v2477_v54 = vpop.permute.xlu1 %2476 }
0x1875   :  { %v2479_v58 = vadd.f32 %v2477_v54, %v2469_v55 }
0x1877   :  { %4252 = vtanh.f32 %v2479_v58  ;;  %v2573_v10 = vrot.slane %v2479_v58, 4 }
0x1881   :  { %v4253_v59 = vpop.eup %4252 }
0x1882   :  { %2482 = vrot.lane.b32.xlu0 %v4253_v59, %s4312_s2 }
0x18f4   :  { %v2483_v63 = vpop.permute.xlu0 %2482 }
0x18f5   :  { %v2485_v62 = vmul.f32 %v4251_v28, %v2483_v63 }
0x18f7   :  { %2487 = vrot.lane.b32.xlu1 %v2485_v62, %s4313_s8 }
0x1969   :  { %v2488_v57 = vpop.permute.xlu1 %2487 }
0x196a   :  { %3738 = vmatmul.mubr.msk.f32.vlgmr.msra.gmra.mrb[20].mxu1 %vm619_vm4, %v2488_v57 }
0x196b   :  { %3908 = vmatpush3.bf16.msra.mxu1 %v4908_v25  ;;  %3748 = vmatprep.mubr.msk.f32.mxu1 %vm4315_vm0, %v4311_v38 }
0x196c   :  { %3909 = vmatprep.subr.bf16.mxu1 %v4314_v13 }
0x196f   :  { %3911 = vmatpush3.bf16.msra.mxu1 %v4919_v31 }
0x1970   :  { %3912 = vmatprep.subr.bf16.mxu1 %v4314_v13 }
0x1a3d   :  { %v2557_v2 = vpop.f32.mrb[20].mxu1 }
0x1a3e   :  { %v2562_v4 = vrot.slane %v2557_v2, 4  ;;  %v3739_v5 = vpop.f32.mrb[21].mxu1 }
0x1a40   :  { %v2564_v6 = vadd.f32 %v2562_v4, %v2369_v43 }
0x1a42   :  { %4254 = vtanh.f32 %v2564_v6  ;;  %v3363_v27 = vmul.f32 -1.442695, %v2564_v6 }
0x1a44   :  { %4256 = vpow2.f32 %v3363_v27 }
0x1a4c   :  { %v4255_v56 = vpop.eup %4254 }
0x1a4d   :  { %2577 = vrot.lane.b32.xlu0 %v4255_v56, %s4312_s2 }
0x1a4e   :  { %v4257_v51 = vpop.eup %4256 }
0x1a4f   :  { %v2568_v9 = vadd.f32 1.0, %v4257_v51 }
0x1a51   :  { %4258 = vrcp.f32 %v2568_v9 }
0x1a5b   :  { %v4259_v42 = vpop.eup %4258 }
0x1a5c   :  { %v2575_v50 = vmul.f32 %v4259_v42, %v2573_v10 }
0x1abf   :  { %v2578_v44 = vpop.permute.xlu0 %2577 }
0x1ac0   :  { %v2580_v49 = vmul.f32 %v4259_v42, %v2578_v44 }
0x1ac2   :  { %2582 = vrot.lane.b32.xlu1 %v2580_v49, %s4313_s8 }
0x1b34   :  { %v2583_v0 = vpop.permute.xlu1 %2582 }
0x1b35   :  { %v2585_v45 = vadd.f32 %v2583_v0, %v2575_v50 }
0x1b37   :  { %4260 = vtanh.f32 %v2585_v45  ;;  %v2677_v3 = vrot.slane %v2585_v45, 4 }
0x1b41   :  { %v4261_v61 = vpop.eup %4260 }
0x1b42   :  { %2588 = vrot.lane.b32.xlu0 %v4261_v61, %s4312_s2 }
0x1bb4   :  { %v2589_v11 = vpop.permute.xlu0 %2588 }
0x1bb5   :  { %v2591_v12 = vmul.f32 %v4259_v42, %v2589_v11 }
0x1bb7   :  { %v2593_v35 = vrot.slane %v2591_v12, 4 }
0x1bb9   :  { %2594 = vrot.lane.b32.xlu1 %v2593_v35, %s4313_s8 }
0x1c2b   :  { %v2595_v14 = vpop.permute.xlu1 %2594 }
0x1c2c   :  { %3749 = vmatmul.mubr.msk.f32.vlgmr.msra.gmra.mrb[22].mxu1 %vm619_vm4, %v2595_v14 }
0x1c2d   :  { %3914 = vmatpush3.bf16.msra.mxu1 %v4908_v25  ;;  %3759 = vmatprep.mubr.msk.f32.mxu1 %vm4315_vm0, %v4311_v38 }
0x1c2e   :  { %3915 = vmatprep.subr.bf16.mxu1 %v4314_v13 }
0x1c31   :  { %3917 = vmatpush3.bf16.msra.mxu1 %v4919_v31 }
0x1c32   :  { %3918 = vmatprep.subr.bf16.mxu1 %v4314_v13 }
0x1cff   :  { %v2664_v15 = vpop.f32.mrb[22].mxu1 }
0x1d00   :  { %v2668_v16 = vadd.f32 %v2664_v15, %v4938_v34  ;;  %v3750_v17 = vpop.f32.mrb[23].mxu1 }
0x1d02   :  { %4262 = vtanh.f32 %v2668_v16  ;;  %v3365_v19 = vmul.f32 -1.442695, %v2668_v16 }
0x1d04   :  { %4264 = vpow2.f32 %v3365_v19 }
0x1d0c   :  { %v4263_v18 = vpop.eup %4262 }
0x1d0d   :  { %2681 = vrot.lane.b32.xlu0 %v4263_v18, %s4312_s2 }
0x1d0e   :  { %v4265_v20 = vpop.eup %4264 }
0x1d0f   :  { %v2672_v22 = vadd.f32 1.0, %v4265_v20 }
0x1d11   :  { %4266 = vrcp.f32 %v2672_v22 }
0x1d1b   :  { %v4267_v24 = vpop.eup %4266 }
0x1d1c   :  { %v2679_v30 = vmul.f32 %v4267_v24, %v2677_v3 }
0x1d7f   :  { %v2682_v26 = vpop.permute.xlu0 %2681 }
0x1d80   :  { %v2684_v1 = vmul.f32 %v4267_v24, %v2682_v26 }
0x1d82   :  { %2686 = vrot.lane.b32.xlu1 %v2684_v1, %s4313_s8 }
0x1df4   :  { %v2687_v7 = vpop.permute.xlu1 %2686 }
0x1df5   :  { %v2689_v8 = vadd.f32 %v2687_v7, %v2679_v30 }
0x1df7   :  { %4268 = vtanh.f32 %v2689_v8  ;;  %v2783_v52 = vrot.slane %v2689_v8, 4 }
0x1e01   :  { %v4269_v32 = vpop.eup %4268 }
0x1e02   :  { %2692 = vrot.lane.b32.xlu0 %v4269_v32, %s4312_s2 }
0x1e74   :  { %v2693_v33 = vpop.permute.xlu0 %2692 }
0x1e75   :  { %v2695_v36 = vmul.f32 %v4267_v24, %v2693_v33 }
0x1e77   :  { %2697 = vrot.lane.b32.xlu1 %v2695_v36, %s4313_s8 }
0x1ee9   :  { %v2698_v37 = vpop.permute.xlu1 %2697 }
0x1eea   :  { %3760 = vmatmul.mubr.msk.f32.vlgmr.msra.gmra.mrb[24].mxu1 %vm619_vm4, %v2698_v37 }
0x1eeb   :  { %3920 = vmatpush3.bf16.msra.mxu1 %v4908_v25  ;;  %3770 = vmatprep.mubr.msk.f32.mxu1 %vm4315_vm0, %v4311_v38 }
0x1eec   :  { %3921 = vmatprep.subr.bf16.mxu1 %v4314_v13 }
0x1eef   :  { %3923 = vmatpush3.bf16.msra.mxu1 %v4919_v31 }
0x1ef0   :  { %3924 = vmatprep.subr.bf16.mxu1 %v4314_v13 }
0x1fbd   :  { %v2767_v40 = vpop.f32.mrb[24].mxu1 }
0x1fbe   :  { %v2772_v43 = vrot.slane %v2767_v40, 4  ;;  %v3761_v46 = vpop.f32.mrb[25].mxu1 }
0x1fc0   :  { %v2774_v47 = vadd.f32 %v2772_v43, %v4938_v34 }
0x1fc2   :  { %4270 = vtanh.f32 %v2774_v47  ;;  %v3367_v21 = vmul.f32 -1.442695, %v2774_v47 }
0x1fc4   :  { %4272 = vpow2.f32 %v3367_v21 }
0x1fcc   :  { %v4271_v48 = vpop.eup %4270 }
0x1fcd   :  { %2787 = vrot.lane.b32.xlu0 %v4271_v48, %s4312_s2 }
0x1fce   :  { %v4273_v23 = vpop.eup %4272 }
0x1fcf   :  { %v2778_v60 = vadd.f32 1.0, %v4273_v23 }
0x1fd1   :  { %4274 = vrcp.f32 %v2778_v60 }
0x1fdb   :  { %v4275_v53 = vpop.eup %4274 }
0x1fdc   :  { %v2785_v55 = vmul.f32 %v4275_v53, %v2783_v52 }
0x203f   :  { %v2788_v28 = vpop.permute.xlu0 %2787 }
0x2040   :  { %v2790_v29 = vmul.f32 %v4275_v53, %v2788_v28 }
0x2042   :  { %2792 = vrot.lane.b32.xlu1 %v2790_v29, %s4313_s8 }
0x20b4   :  { %v2793_v54 = vpop.permute.xlu1 %2792 }
0x20b5   :  { %v2795_v58 = vadd.f32 %v2793_v54, %v2785_v55 }
0x20b7   :  { %4276 = vtanh.f32 %v2795_v58  ;;  %v2887_v49 = vrot.slane %v2795_v58, 4 }
0x20c1   :  { %v4277_v34 = vpop.eup %4276 }
0x20c2   :  { %2798 = vrot.lane.b32.xlu0 %v4277_v34, %s4312_s2 }
0x2134   :  { %v2799_v59 = vpop.permute.xlu0 %2798 }
0x2135   :  { %v2801_v63 = vmul.f32 %v4275_v53, %v2799_v59 }
0x2137   :  { %v2803_v62 = vrot.slane %v2801_v63, 4 }
0x2139   :  { %2804 = vrot.lane.b32.xlu1 %v2803_v62, %s4313_s8 }
0x21ab   :  { %v2805_v57 = vpop.permute.xlu1 %2804 }
0x21ac   :  { %3771 = vmatmul.mubr.msk.f32.vlgmr.msra.gmra.mrb[26].mxu1 %vm619_vm4, %v2805_v57 }
0x21ad   :  { %3926 = vmatpush3.bf16.msra.mxu1 %v4908_v25  ;;  %3781 = vmatprep.mubr.msk.f32.mxu1 %vm4315_vm0, %v4311_v38 }
0x21ae   :  { %3927 = vmatprep.subr.bf16.mxu1 %v4314_v13 }
0x21b1   :  { %3929 = vmatpush3.bf16.msra.mxu1 %v4919_v31 }
0x21b2   :  { %3930 = vmatprep.subr.bf16.mxu1 %v4314_v13 }
0x227f   :  { %v2874_v2 = vpop.f32.mrb[26].mxu1 }
0x2280   :  { %v2878_v4 = vadd.f32 %v2874_v2, %v4942_v41  ;;  %v3772_v5 = vpop.f32.mrb[27].mxu1 }
0x2282   :  { %4278 = vtanh.f32 %v2878_v4  ;;  %v3369_v56 = vmul.f32 -1.442695, %v2878_v4 }
0x2284   :  { %4280 = vpow2.f32 %v3369_v56 }
0x228c   :  { %v4279_v6 = vpop.eup %4278 }
0x228d   :  { %2891 = vrot.lane.b32.xlu0 %v4279_v6, %s4312_s2 }
0x228e   :  { %v4281_v27 = vpop.eup %4280 }
0x228f   :  { %v2882_v51 = vadd.f32 1.0, %v4281_v27 }
0x2291   :  { %4282 = vrcp.f32 %v2882_v51 }
0x229b   :  { %v4283_v9 = vpop.eup %4282 }
0x229c   :  { %v2889_v10 = vmul.f32 %v4283_v9, %v2887_v49 }
0x22ff   :  { %v2892_v42 = vpop.permute.xlu0 %2891 }
0x2300   :  { %v2894_v44 = vmul.f32 %v4283_v9, %v2892_v42 }
0x2302   :  { %2896 = vrot.lane.b32.xlu1 %v2894_v44, %s4313_s8 }
0x2374   :  { %v2897_v50 = vpop.permute.xlu1 %2896 }
0x2375   :  { %v2899_v0 = vadd.f32 %v2897_v50, %v2889_v10 }
0x2377   :  { %4284 = vtanh.f32 %v2899_v0  ;;  %v2993_v1 = vrot.slane %v2899_v0, 4 }
0x2381   :  { %v4285_v45 = vpop.eup %4284 }
0x2382   :  { %2902 = vrot.lane.b32.xlu0 %v4285_v45, %s4312_s2 }
0x23f4   :  { %v2903_v61 = vpop.permute.xlu0 %2902 }
0x23f5   :  { %v2905_v11 = vmul.f32 %v4283_v9, %v2903_v61 }
0x23f7   :  { %2907 = vrot.lane.b32.xlu1 %v2905_v11, %s4313_s8 }
0x2469   :  { %v2908_v12 = vpop.permute.xlu1 %2907 }
0x246a   :  { %3782 = vmatmul.mubr.msk.f32.vlgmr.msra.gmra.mrb[28].mxu1 %vm619_vm4, %v2908_v12 }
0x246b   :  { %3932 = vmatpush3.bf16.msra.mxu1 %v4908_v25  ;;  %3792 = vmatprep.mubr.msk.f32.mxu1 %vm4315_vm0, %v4311_v38 }
0x246c   :  { %3933 = vmatprep.subr.bf16.mxu1 %v4314_v13 }
0x246f   :  { %3935 = vmatpush3.bf16.msra.mxu1 %v4919_v31 }
0x2470   :  { %3936 = vmatprep.subr.bf16.mxu1 %v4314_v13 }
0x253d   :  { %v2977_v35 = vpop.f32.mrb[28].mxu1 }
0x253e   :  { %v2982_v14 = vrot.slane %v2977_v35, 4  ;;  %v3783_v15 = vpop.f32.mrb[29].mxu1 }
0x2540   :  { %v2984_v16 = vadd.f32 %v2982_v14, %v4942_v41 }
0x2542   :  { %4286 = vtanh.f32 %v2984_v16  ;;  %v3371_v18 = vmul.f32 -1.442695, %v2984_v16 }
0x2544   :  { %4288 = vpow2.f32 %v3371_v18 }
0x254c   :  { %v4287_v17 = vpop.eup %4286 }
0x254d   :  { %2997 = vrot.lane.b32.xlu0 %v4287_v17, %s4312_s2 }
0x254e   :  { %v4289_v19 = vpop.eup %4288 }
0x254f   :  { %v2988_v20 = vadd.f32 1.0, %v4289_v19 }
0x2551   :  { %4290 = vrcp.f32 %v2988_v20 }
0x255b   :  { %v4291_v22 = vpop.eup %4290 }
0x255c   :  { %v2995_v3 = vmul.f32 %v4291_v22, %v2993_v1 }
0x25bf   :  { %v2998_v24 = vpop.permute.xlu0 %2997 }
0x25c0   :  { %v3000_v26 = vmul.f32 %v4291_v22, %v2998_v24 }
0x25c2   :  { %3002 = vrot.lane.b32.xlu1 %v3000_v26, %s4313_s8 }
0x2634   :  { %v3003_v30 = vpop.permute.xlu1 %3002 }
0x2635   :  { %v3005_v7 = vadd.f32 %v3003_v30, %v2995_v3 }
0x2637   :  { %4292 = vtanh.f32 %v3005_v7 }
0x2641   :  { %v4293_v41 = vpop.eup %4292 }
0x2642   :  { %3008 = vrot.lane.b32.xlu0 %v4293_v41, %s4312_s2 }
0x26b4   :  { %v3009_v8 = vpop.permute.xlu0 %3008 }
0x26b5   :  { %v3011_v32 = vmul.f32 %v4291_v22, %v3009_v8 }
0x26b7   :  { %v3013_v33 = vrot.slane %v3011_v32, 4 }
0x26b9   :  { %3014 = vrot.lane.b32.xlu1 %v3013_v33, %s4313_s8 }
0x272b   :  { %v3015_v36 = vpop.permute.xlu1 %3014 }
0x272c   :  { %3793 = vmatmul.mubr.msk.f32.vlgmr.msra.gmra.mrb[30].mxu1 %vm619_vm4, %v3015_v36 }
0x272d   :  { %3938 = vmatpush3.bf16.msra.mxu1 %v4908_v25  ;;  %3803 = vmatprep.mubr.msk.f32.mxu1 %vm4315_vm0, %v4311_v38 }
0x272e   :  { %3939 = vmatprep.subr.bf16.mxu1 %v4314_v13  ;;  %v3097_v13 = vrot.slane %v3005_v7, 4 }
0x2731   :  { %3941 = vmatpush3.bf16.msra.mxu1 %v4919_v31 }
0x27ff   :  { %v3084_v37 = vpop.f32.mrb[30].mxu1 }
0x2800   :  { %v3088_v40 = vadd.f32 %v3084_v37, %v4940_v39  ;;  %v3794_v43 = vpop.f32.mrb[31].mxu1 }
0x2802   :  { %4294 = vtanh.f32 %v3088_v40  ;;  %v3373_v47 = vmul.f32 -1.442695, %v3088_v40 }
0x2804   :  { %4296 = vpow2.f32 %v3373_v47 }
0x280c   :  { %v4295_v46 = vpop.eup %4294 }
0x280d   :  { %3101 = vrot.lane.b32.xlu0 %v4295_v46, %s4312_s2 }
0x280e   :  { %v4297_v48 = vpop.eup %4296 }
0x280f   :  { %v3092_v21 = vadd.f32 1.0, %v4297_v48 }
0x2811   :  { %4298 = vrcp.f32 %v3092_v21 }
0x281b   :  { %v4299_v25 = vpop.eup %4298 }
0x281c   :  { %v3099_v31 = vmul.f32 %v4299_v25, %v3097_v13 }
0x287f   :  { %v3102_v23 = vpop.permute.xlu0 %3101 }
0x2880   :  { %v3104_v38 = vmul.f32 %v4299_v25, %v3102_v23 }
0x2882   :  { %3106 = vrot.lane.b32.xlu1 %v3104_v38, %s4313_s8 }
0x28f4   :  { %v3107_v60 = vpop.permute.xlu1 %3106 }
0x28f5   :  { %v3109_v53 = vadd.f32 %v3107_v60, %v3099_v31 }
0x28f7   :  { %4300 = vtanh.f32 %v3109_v53  ;;  %v3203_v56 = vrot.slane %v3109_v53, 4 }
0x2901   :  { %v4301_v28 = vpop.eup %4300 }
0x2902   :  { %3112 = vrot.lane.b32.xlu0 %v4301_v28, %s4312_s2 }
0x2974   :  { %v3113_v29 = vpop.permute.xlu0 %3112 }
0x2975   :  { %v3115_v52 = vmul.f32 %v4299_v25, %v3113_v29 }
0x2977   :  { %3117 = vrot.lane.b32.xlu1 %v3115_v52, %s4313_s8 }
0x29e9   :  { %v3118_v55 = vpop.permute.xlu1 %3117 }
0x29ea   :  { %3804 = vmatmul.mubr.msk.f32.vlgmr.msra.gmra.mrb[32].mxu1 %vm619_vm4, %v3118_v55  ;;  %vm3226_vm4 = vcmask 261124  }
0x2abd   :  { %v3187_v54 = vpop.f32.mrb[32].mxu1 }
0x2abe   :  { %v3192_v58 = vrot.slane %v3187_v54, 4  ;;  %v3805_v34 = vpop.f32.mrb[33].mxu1 }
0x2ac0   :  { %v3194_v59 = vadd.f32 %v3192_v58, %v4940_v39 }
0x2ac2   :  { %4302 = vtanh.f32 %v3194_v59  ;;  %v3375_v62 = vmul.f32 -1.442695, %v3194_v59 }
0x2ac4   :  { %4304 = vpow2.f32 %v3375_v62 }
0x2acc   :  { %v4303_v63 = vpop.eup %4302 }
0x2acd   :  { %3207 = vrot.lane.b32.xlu0 %v4303_v63, %s4312_s2 }
0x2ace   :  { %v4305_v57 = vpop.eup %4304 }
0x2acf   :  { %v3198_v2 = vadd.f32 1.0, %v4305_v57 }
0x2ad1   :  { %4306 = vrcp.f32 %v3198_v2 }
0x2adb   :  { %v4307_v4 = vpop.eup %4306 }
0x2adc   :  { %v3205_v27 = vmul.f32 %v4307_v4, %v3203_v56 }
0x2b3f   :  { %v3208_v5 = vpop.permute.xlu0 %3207 }
0x2b40   :  { %v3210_v6 = vmul.f32 %v4307_v4, %v3208_v5 }
0x2b42   :  { %3212 = vrot.lane.b32.xlu1 %v3210_v6, %s4313_s8 }
0x2bb4   :  { %v3213_v51 = vpop.permute.xlu1 %3212 }
0x2bb5   :  { %v3215_v9 = vadd.f32 %v3213_v51, %v3205_v27 }
0x2bb7   :  { %4308 = vtanh.f32 %v3215_v9 }
0x2bc1   :  { %v4309_v39 = vpop.eup %4308 }
0x2bc2   :  { %3218 = vrot.lane.b32.xlu0 %v4309_v39, %s4312_s2 }
0x2c34   :  { %v3219_v42 = vpop.permute.xlu0 %3218 }
0x2c35   :  { %v3221_v44 = vmul.f32 %v4307_v4, %v3219_v42 }
0x2c37   :  { %3223 = vrot.lane.b32.xlu1 %v3221_v44, %s4313_s8 }
0x2ca9   :  { %v3224_v49 = vpop.permute.xlu1 %3223 }
0x2caa   :  { %3227 = vst.msk [vmem:[%s5033_s6 - $0x4] sm:$0xf0] %vm3226_vm4, %v3224_v49 }

</bundles_post_ra>
